<compile_context>
chip_gen: v7x
topology: tpu7x:2x2x1
jax: 0.10.0
libtpu: 0.0.40
codegen_flags: <defaults>
</compile_context>

<pallas_src>
import jax
import jax.numpy as jnp
from jax.experimental import pallas as pl
from jax.experimental.pallas import tpu as pltpu

_LANE = 128


def _round_up(x, m):
    return (x + m - 1) // m * m


def _pad2d(a, rows, cols):
    a = jnp.asarray(a, jnp.float32)
    r, c = a.shape
    return jnp.pad(a, ((0, rows - r), (0, cols - c)))


def _block_diag(blocks):
    """Block-diagonal stack of 2-D arrays (identity for a single block)."""
    if len(blocks) == 1:
        return blocks[0]
    rows = sum(b.shape[0] for b in blocks)
    cols = sum(b.shape[1] for b in blocks)
    out = jnp.zeros((rows, cols), blocks[0].dtype)
    r = c = 0
    for b in blocks:
        out = out.at[r:r + b.shape[0], c:c + b.shape[1]].set(b)
        r += b.shape[0]
        c += b.shape[1]
    return out


def _ddqn_fused_kernel(x_ref, w1_ref, b1_ref, w2_ref, b2_ref, w3_ref, b3_ref, q_ref):
    """One batch tile through the fused (concat / block-diagonal) 3-layer MLP.

    x: (tb, s_pad) bf16.  Weights bf16, biases f32.  Accumulation, bias-add
    and ReLU in f32; intermediate matmul LHS re-cast to bf16 for the MXU.
    """
    x = x_ref[...]
    h = jnp.dot(x, w1_ref[...], preferred_element_type=jnp.float32)
    h = jnp.maximum(h + b1_ref[...], 0.0)
    h = jnp.dot(h.astype(jnp.bfloat16), w2_ref[...],
                preferred_element_type=jnp.float32)
    h = jnp.maximum(h + b2_ref[...], 0.0)
    q = jnp.dot(h.astype(jnp.bfloat16), w3_ref[...],
                preferred_element_type=jnp.float32)
    q_ref[...] = (q + b3_ref[...]).astype(q_ref.dtype)


def prep_fused_params(param_sets):
    """Pad + bf16-cast + fuse one or more DQN parameter sets.

    Call ONCE per weight update (optimizer step / target-network sync), not
    per forward call — this is the hoisted pad/cast path from the review.
    Pad regions are kept zero so padded lanes contribute nothing.
    """
    n = len(param_sets)
    S, H = param_sets[0]["w1"].shape
    A = param_sets[0]["w3"].shape[1]
    s_pad = _round_up(S, _LANE)
    h_pad = _round_up(H, _LANE)
    a_pad = _round_up(A, _LANE)

    def pad_b(b, c):
        return _pad2d(jnp.asarray(b, jnp.float32).reshape(1, -1), 1, c)

    w1 = jnp.concatenate([_pad2d(p["w1"], s_pad, h_pad) for p in param_sets],
                         axis=1).astype(jnp.bfloat16)
    b1 = jnp.concatenate([pad_b(p["b1"], h_pad) for p in param_sets], axis=1)
    w2 = _block_diag([_pad2d(p["w2"], h_pad, h_pad) for p in param_sets]
                     ).astype(jnp.bfloat16)
    b2 = jnp.concatenate([pad_b(p["b2"], h_pad) for p in param_sets], axis=1)
    w3 = _block_diag([_pad2d(p["w3"], h_pad, a_pad) for p in param_sets]
                     ).astype(jnp.bfloat16)
    b3 = jnp.concatenate([pad_b(p["b3"], a_pad) for p in param_sets], axis=1)

    meta = dict(n_nets=n, state_dim=S, hidden_dim=H, action_dim=A,
                s_pad=s_pad, h_pad=h_pad, a_pad=a_pad)
    return {"w1": w1, "b1": b1, "w2": w2, "b2": b2, "w3": w3, "b3": b3,
            "meta": meta}


def ddqn_apply(state, prepped, *, tb=None, out_dtype=jnp.float32):
    """Run the fused MLP kernel on `state` with pre-prepped (cached) params.

    Returns one (B, action_dim) array per fused network.
    """
    meta = prepped["meta"]
    n = meta["n_nets"]
    S, A = meta["state_dim"], meta["action_dim"]
    s_pad, h_pad, a_pad = meta["s_pad"], meta["h_pad"], meta["a_pad"]
    B = state.shape[0]
    assert state.shape[1] == S

    # Batch tile: whole (padded) batch in one grid step when reasonable,
    # otherwise 512-row tiles.  Grid is a sequential loop on v5e/v6e, so
    # fewer steps == less per-step overhead for this latency-bound kernel.
    b_128 = _round_up(B, _LANE)
    if tb is None:
        tb = b_128 if b_128 <= 4096 else 512
    tb = _round_up(max(int(tb), 128), 128)
    tb = min(tb, b_128)
    b_pad = _round_up(B, tb)
    grid_steps = b_pad // tb

    # TODO(synk): if the caller keeps `state` pre-padded/bf16, hoist this too.
    x = _pad2d(state, b_pad, s_pad).astype(jnp.bfloat16)

    w1, b1, w2, b2, w3, b3 = (prepped[k] for k in
                              ("w1", "b1", "w2", "b2", "w3", "b3"))
    ho = n * h_pad   # fused hidden width  (256 for 2 nets)
    ao = n * a_pad   # fused output width  (256 for 2 nets)

    # x / q tiled along the batch grid axis; weights/biases resident
    # (constant index_map -> no re-DMA per grid step).
    x_spec = pl.BlockSpec((tb, s_pad), lambda i: (i, 0))

    def resident(shape):
        return pl.BlockSpec(shape, lambda i: (0, 0))

    q_spec = pl.BlockSpec((tb, ao), lambda i: (i, 0))

    out_itemsize = jnp.dtype(out_dtype).itemsize
    weight_bytes = sum(prepped[k].size * prepped[k].dtype.itemsize
                       for k in ("w1", "b1", "w2", "b2", "w3", "b3"))

    flops = 2 * b_pad * (s_pad * ho + ho * ho + ho * ao)
    bytes_accessed = (x.size * x.dtype.itemsize + weight_bytes
                      + b_pad * ao * out_itemsize)
    cost = pl.CostEstimate(flops=int(flops), transcendentals=0,
                           bytes_accessed=int(bytes_accessed))

    # VMEM guard only — actual per-step usage is a few MiB at these shapes.
    streamed = 2 * tb * s_pad * 2 + 2 * tb * ao * out_itemsize
    act = 3 * tb * ho * 4
    vmem_limit = int(min(64 << 20, max(16 << 20,
                                       2 * (weight_bytes + streamed + act))))

    # Only shard across TensorCores (v7x) when each core gets several tiles.
    semantics = ("parallel",) if grid_steps >= 4 else ("arbitrary",)

    q = pl.pallas_call(
        _ddqn_fused_kernel,
        grid=(grid_steps,),
        in_specs=[x_spec, resident(w1.shape), resident(b1.shape),
                  resident(w2.shape), resident(b2.shape),
                  resident(w3.shape), resident(b3.shape)],
        out_specs=q_spec,
        out_shape=jax.ShapeDtypeStruct((b_pad, ao), out_dtype),
        compiler_params=pltpu.CompilerParams(
            dimension_semantics=semantics,
            vmem_limit_bytes=vmem_limit),
        cost_estimate=cost,
    )(x, w1, b1, w2, b2, w3, b3)

    return tuple(q[:B, i * a_pad:i * a_pad + A] for i in range(n))


def ddqn_forward(state, params, *, tb=None):
    """Single-network forward: state (B, state_dim) -> q (B, action_dim)."""
    return ddqn_apply(state, prep_fused_params([params]), tb=tb)[0]


def ddqn_forward_both(state, params_online, params_target, *, tb=None):
    """Fused online + target evaluation (the common Double-DQN step)."""
    return ddqn_apply(state, prep_fused_params([params_online, params_target]),
                      tb=tb)


def init_params(key, state_dim, hidden_dim, action_dim):
    """Deterministic init mimicking torch.nn.Linear default (+/- 1/sqrt(fan_in))."""
    ks = jax.random.split(key, 6)

    def linear(kw, kb, fan_in, fan_out):
        bound = 1.0 / jnp.sqrt(fan_in)
        w = jax.random.uniform(kw, (fan_in, fan_out), jnp.float32, -bound, bound)
        b = jax.random.uniform(kb, (1, fan_out), jnp.float32, -bound, bound)
        return w, b

    w1, b1 = linear(ks[0], ks[1], state_dim, hidden_dim)
    w2, b2 = linear(ks[2], ks[3], hidden_dim, hidden_dim)
    w3, b3 = linear(ks[4], ks[5], hidden_dim, action_dim)
    return {"w1": w1, "b1": b1, "w2": w2, "b2": b2, "w3": w3, "b3": b3}


if __name__ == "__main__":
    # Replay-buffer-sized batch with the module's small feature dims.
    batch, state_dim, hidden_dim, action_dim = 512, 16, 32, 4

    key = jax.random.PRNGKey(0)
    k_on, k_tg, k_state = jax.random.split(key, 3)
    params_online = init_params(k_on, state_dim, hidden_dim, action_dim)
    params_target = init_params(k_tg, state_dim, hidden_dim, action_dim)
    state = jax.random.normal(k_state, (batch, state_dim), jnp.float32)

    # Hoisted weight prep (done once per weight update, reused across calls).
    prepped_both = prep_fused_params([params_online, params_target])
    q_online, q_target = ddqn_apply(state, prepped_both)
    jax.block_until_ready((q_online, q_target))

    # Single-network path (plain module forward).
    q_single = ddqn_forward(state, params_online)
    jax.block_until_ready(q_single)

    # Plain-JAX f32 reference (same math as the torch module).
    def ref_fwd(x, p):
        h = jnp.maximum(x @ p["w1"] + p["b1"], 0.0)
        h = jnp.maximum(h @ p["w2"] + p["b2"], 0.0)
        return h @ p["w3"] + p["b3"]

    ref_on = ref_fwd(state, params_online)
    ref_tg = ref_fwd(state, params_target)

    assert q_online.shape == (batch, action_dim)
    assert q_target.shape == (batch, action_dim)
    assert q_single.shape == (batch, action_dim)

    # bf16 MXU operands + bf16 intermediate casts -> compare with a relative
    # tolerance vs the f32 reference (documented looseness, fine for DQN).
    for got, ref in ((q_online, ref_on), (q_target, ref_tg), (q_single, ref_on)):
        scale = float(jnp.max(jnp.abs(ref))) + 1e-6
        err = float(jnp.max(jnp.abs(got - ref)))
        assert err / scale < 3e-2, f"max rel err {err / scale:.4f}"

    print("KERNEL_OK")
</pallas_src>

<mosaic_0001>
module attributes {stable_mosaic.version = 11 : i64} {
  func.func @_ddqn_fused_kernel(%arg0: i32, %arg1: memref<512x128xbf16, #tpu.memory_space<vmem>>, %arg2: memref<128x256xbf16, #tpu.memory_space<vmem>>, %arg3: memref<1x256xf32, #tpu.memory_space<vmem>>, %arg4: memref<256x256xbf16, #tpu.memory_space<vmem>>, %arg5: memref<1x256xf32, #tpu.memory_space<vmem>>, %arg6: memref<256x256xbf16, #tpu.memory_space<vmem>>, %arg7: memref<1x256xf32, #tpu.memory_space<vmem>>, %arg8: memref<512x256xf32, #tpu.memory_space<vmem>>) attributes {dimension_semantics = [#tpu.dimension_semantics<arbitrary>], iteration_bounds = array<i64: 1>, scalar_prefetch = 0 : i64, scratch_operands = 0 : i64, tpu.core_type = #tpu.core_type<tc>, window_params = [{transform_indices = @transform_0, window_bounds = array<i64: 512, 128>}, {pipeline_mode = #tpu.pipeline_mode<synchronous>, transform_indices = @transform_1, window_bounds = array<i64: 128, 256>}, {pipeline_mode = #tpu.pipeline_mode<synchronous>, transform_indices = @transform_2, window_bounds = array<i64: 1, 256>}, {pipeline_mode = #tpu.pipeline_mode<synchronous>, transform_indices = @transform_3, window_bounds = array<i64: 256, 256>}, {pipeline_mode = #tpu.pipeline_mode<synchronous>, transform_indices = @transform_4, window_bounds = array<i64: 1, 256>}, {pipeline_mode = #tpu.pipeline_mode<synchronous>, transform_indices = @transform_5, window_bounds = array<i64: 256, 256>}, {pipeline_mode = #tpu.pipeline_mode<synchronous>, transform_indices = @transform_6, window_bounds = array<i64: 1, 256>}, {transform_indices = @transform_7, window_bounds = array<i64: 512, 256>}]} {
    %c0 = arith.constant 0 : index
    %c0_0 = arith.constant 0 : index
    %0 = vector.load %arg1[%c0, %c0_0] : memref<512x128xbf16, #tpu.memory_space<vmem>>, vector<512x128xbf16>
    %c0_1 = arith.constant 0 : index
    %c0_2 = arith.constant 0 : index
    %1 = vector.load %arg2[%c0_1, %c0_2] : memref<128x256xbf16, #tpu.memory_space<vmem>>, vector<128x256xbf16>
    %cst = arith.constant dense<0.000000e+00> : vector<512x256xf32>
    %2 = tpu.matmul %0, %1, %cst {dimension_numbers = #tpu.dot_dimension_numbers<[1], [0], [0], [1], [0, 0, 1, 1], [], []>} : vector<512x128xbf16>, vector<128x256xbf16>, vector<512x256xf32> -> vector<512x256xf32>
    %c0_3 = arith.constant 0 : index
    %c0_4 = arith.constant 0 : index
    %3 = vector.load %arg3[%c0_3, %c0_4] : memref<1x256xf32, #tpu.memory_space<vmem>>, vector<1x256xf32>
    %4 = vector.broadcast %3 : vector<1x256xf32> to vector<512x256xf32>
    %5 = arith.addf %2, %4 : vector<512x256xf32>
    %cst_5 = arith.constant 0.000000e+00 : f32
    %6 = vector.broadcast %cst_5 : f32 to vector<512x256xf32>
    %7 = arith.maximumf %5, %6 : vector<512x256xf32>
    %8 = arith.truncf %7 : vector<512x256xf32> to vector<512x256xbf16>
    %c0_6 = arith.constant 0 : index
    %c0_7 = arith.constant 0 : index
    %9 = vector.load %arg4[%c0_6, %c0_7] : memref<256x256xbf16, #tpu.memory_space<vmem>>, vector<256x256xbf16>
    %cst_8 = arith.constant dense<0.000000e+00> : vector<512x256xf32>
    %10 = tpu.matmul %8, %9, %cst_8 {dimension_numbers = #tpu.dot_dimension_numbers<[1], [0], [0], [1], [0, 0, 1, 1], [], []>} : vector<512x256xbf16>, vector<256x256xbf16>, vector<512x256xf32> -> vector<512x256xf32>
    %c0_9 = arith.constant 0 : index
    %c0_10 = arith.constant 0 : index
    %11 = vector.load %arg5[%c0_9, %c0_10] : memref<1x256xf32, #tpu.memory_space<vmem>>, vector<1x256xf32>
    %12 = vector.broadcast %11 : vector<1x256xf32> to vector<512x256xf32>
    %13 = arith.addf %10, %12 : vector<512x256xf32>
    %cst_11 = arith.constant 0.000000e+00 : f32
    %14 = vector.broadcast %cst_11 : f32 to vector<512x256xf32>
    %15 = arith.maximumf %13, %14 : vector<512x256xf32>
    %16 = arith.truncf %15 : vector<512x256xf32> to vector<512x256xbf16>
    %c0_12 = arith.constant 0 : index
    %c0_13 = arith.constant 0 : index
    %17 = vector.load %arg6[%c0_12, %c0_13] : memref<256x256xbf16, #tpu.memory_space<vmem>>, vector<256x256xbf16>
    %cst_14 = arith.constant dense<0.000000e+00> : vector<512x256xf32>
    %18 = tpu.matmul %16, %17, %cst_14 {dimension_numbers = #tpu.dot_dimension_numbers<[1], [0], [0], [1], [0, 0, 1, 1], [], []>} : vector<512x256xbf16>, vector<256x256xbf16>, vector<512x256xf32> -> vector<512x256xf32>
    %c0_15 = arith.constant 0 : index
    %c0_16 = arith.constant 0 : index
    %19 = vector.load %arg7[%c0_15, %c0_16] : memref<1x256xf32, #tpu.memory_space<vmem>>, vector<1x256xf32>
    %20 = vector.broadcast %19 : vector<1x256xf32> to vector<512x256xf32>
    %21 = arith.addf %18, %20 : vector<512x256xf32>
    %c0_17 = arith.constant 0 : index
    %c0_18 = arith.constant 0 : index
    %22 = vector.load %arg8[%c0_17, %c0_18] : memref<512x256xf32, #tpu.memory_space<vmem>>, vector<512x256xf32>
    tpu.vector_store %arg8[%c0_17, %c0_18], %21 {strides = array<i32>} : memref<512x256xf32, #tpu.memory_space<vmem>>, vector<512x256xf32>,
    return
  }
  func.func @transform_0(%arg0: i32) -> (i32, i32) {
    %c0_i32 = arith.constant 0 : i32
    %c0_i32_0 = arith.constant 0 : i32
    return %arg0, %c0_i32 : i32, i32
  }
  func.func @transform_1(%arg0: i32) -> (i32, i32) {
    %c0_i32 = arith.constant 0 : i32
    %c0_i32_0 = arith.constant 0 : i32
    %c0_i32_1 = arith.constant 0 : i32
    return %c0_i32, %c0_i32_0 : i32, i32
  }
  func.func @transform_2(%arg0: i32) -> (i32, i32) {
    %c0_i32 = arith.constant 0 : i32
    %c0_i32_0 = arith.constant 0 : i32
    %c0_i32_1 = arith.constant 0 : i32
    return %c0_i32, %c0_i32_0 : i32, i32
  }
  func.func @transform_3(%arg0: i32) -> (i32, i32) {
    %c0_i32 = arith.constant 0 : i32
    %c0_i32_0 = arith.constant 0 : i32
    %c0_i32_1 = arith.constant 0 : i32
    return %c0_i32, %c0_i32_0 : i32, i32
  }
  func.func @transform_4(%arg0: i32) -> (i32, i32) {
    %c0_i32 = arith.constant 0 : i32
    %c0_i32_0 = arith.constant 0 : i32
    %c0_i32_1 = arith.constant 0 : i32
    return %c0_i32, %c0_i32_0 : i32, i32
  }
  func.func @transform_5(%arg0: i32) -> (i32, i32) {
    %c0_i32 = arith.constant 0 : i32
    %c0_i32_0 = arith.constant 0 : i32
    %c0_i32_1 = arith.constant 0 : i32
    return %c0_i32, %c0_i32_0 : i32, i32
  }
  func.func @transform_6(%arg0: i32) -> (i32, i32) {
    %c0_i32 = arith.constant 0 : i32
    %c0_i32_0 = arith.constant 0 : i32
    %c0_i32_1 = arith.constant 0 : i32
    return %c0_i32, %c0_i32_0 : i32, i32
  }
  func.func @transform_7(%arg0: i32) -> (i32, i32) {
    %c0_i32 = arith.constant 0 : i32
    %c0_i32_0 = arith.constant 0 : i32
    return %arg0, %c0_i32 : i32, i32
  }
}

</mosaic_0001>

<bundles_post_ra>
// kernel: tpu_custom_call.1
= control target key start
LH: loop header
LB: loop body
LE: loop exit
PB: predicated region body
PF: predicated region fallthrough
CT: control target
= control target key end

     0   :  { %12 = vsyncpa [#allocation3], 0  ;;  %s3526_s0 = inlined_call_operand.hbm [shape: bf16[512,128], index: 0, kind: input, shape index: {}]   ;;  %s3527_s1 = inlined_call_operand.hbm [shape: bf16[128,256], index: 1, kind: input, shape index: {}]   ;;  %s3528_s2 = inlined_call_operand.vmem [shape: f32[1,256], index: 2, kind: input, shape index: {}]   ;;  %s3529_s3 = inlined_call_operand.hbm [shape: bf16[256,256], index: 3, kind: input, shape index: {}]   ;;  %s3530_s4 = inlined_call_operand.vmem [shape: f32[1,256], index: 4, kind: input, shape index: {}]   ;;  %s3531_s5 = inlined_call_operand.hbm [shape: bf16[256,256], index: 5, kind: input, shape index: {}]   ;;  %s3532_s6 = inlined_call_operand.vmem [shape: f32[1,256], index: 6, kind: input, shape index: {}]   ;;  %s3533_s7 = inlined_call_operand.hbm [shape: f32[512,256], index: 7, kind: output, shape index: {}]  }
   0x1   :  { %13 = vsyncpa [#allocation6], 0 }
   0x2   :  { %14 = vsyncpa [#allocation9], 0 }
   0x3   :  { %15 = vsyncpa [#allocation4], 0  ;;  %s2855_s24 = smov [#allocation5]   ;;  %s2737_s28 = scalar_lea.hbm %s3527_s1, 2048 }
   0x4   :  { %s33_s25 = sshll.u32 %s2855_s24, 4  ;;  %p2738_p0 = scmp.ne.s32.totalorder %s3527_s1, %s2737_s28  ;;  %s34_s25 = int_to_ptr.vmem [resolvable:$true] %s33_s25 }
   0x5   :  { %p2741_p1 = scmp.lt.u32.totalorder %s2737_s28, %s3527_s1 }
   0x7   :  { %p2743_p2 = pnand %p2741_p1, %p2738_p0 }
   0x9   :  { %2746 = shalt.err (!%p2743_p2)
}
   0xa   :  { %s2747_s10 = scalar_lea.vmem %s34_s25, 2048  ;;  %p2752_p4 = scmp.lt.s32.totalorder %s34_s25, %s34_s25 }
   0xb   :  { %p2748_p3 = scmp.ne.s32.totalorder %s34_s25, %s2747_s10  ;;  %p2753_p5 = scmp.lt.s32.totalorder %s2747_s10, %s2747_s10 }
   0xd   :  { %p2754_p6 = por %p2753_p5, %p2752_p4 }
   0xf   :  { %p2755_p7 = pnand %p2754_p6, %p2748_p3 }
  0x11   :  { %2758 = shalt.err (!%p2755_p7)
}
  0x12   :  { %s2856_s11 = smov 128   ;;  %s2857_s12 = smov 8  }
  0x13   :  { %39 = dma.hbm_to_vmem [thread:$0]  %s3527_s1, 2048, %s34_s25, [#allocation6], %s2856_s11, %s2856_s11, %s2857_s12  }
  0x14   :  { %s2858_s15 = smov [#allocation2]   ;;  %s2759_s19 = scalar_lea.hbm %s3526_s0, 4096 }
  0x15   :  { %s21_s16 = sshll.u32 %s2858_s15, 4  ;;  %p2760_p8 = scmp.ne.s32.totalorder %s3526_s0, %s2759_s19  ;;  %s22_s16 = int_to_ptr.vmem [resolvable:$true] %s21_s16 }
  0x16   :  { %p2763_p9 = scmp.lt.u32.totalorder %s2759_s19, %s3526_s0 }
  0x18   :  { %p2765_p10 = pnand %p2763_p9, %p2760_p8 }
  0x1a   :  { %2768 = shalt.err (!%p2765_p10)
}
  0x1b   :  { %s2769_s24 = scalar_lea.vmem %s22_s16, 4096  ;;  %p2774_p12 = scmp.lt.s32.totalorder %s22_s16, %s22_s16 }
  0x1c   :  { %p2770_p11 = scmp.ne.s32.totalorder %s22_s16, %s2769_s24  ;;  %p2775_p13 = scmp.lt.s32.totalorder %s2769_s24, %s2769_s24 }
  0x1e   :  { %p2776_p0 = por %p2775_p13, %p2774_p12 }
  0x20   :  { %p2777_p1 = pnand %p2776_p0, %p2770_p11 }
  0x22   :  { %2780 = shalt.err (!%p2777_p1)
}
  0x23   :  { %s2859_s1 = smov 64   ;;  %s2860_s25 = smov 4  }
  0x24   :  { %27 = dma.hbm_to_vmem [thread:$0]  %s3526_s0, 4096, %s22_s16, [#allocation3], %s2859_s1, %s2859_s1, %s2860_s25  }
  0x25   :  { %s2861_s28 = smov [#allocation7]   ;;  %s2862_s30 = smov [#allocation8]  }
  0x26   :  { %s47_s29 = sshll.u32 %s2861_s28, 4  ;;  %s61_s8 = sshll.u32 %s2862_s30, 4  ;;  %s48_s29 = int_to_ptr.vmem [resolvable:$true] %s47_s29  ;;  %s2934_s8 = int_to_ptr.vmem [resolvable:$true] %s61_s8 }
  0x27   :  { %s2781_s13 = scalar_lea.hbm %s3529_s3, 4096 }
  0x28   :  { %p2782_p2 = scmp.ne.s32.totalorder %s3529_s3, %s2781_s13  ;;  %p2785_p3 = scmp.lt.u32.totalorder %s2781_s13, %s3529_s3 }
  0x2a   :  { %p2787_p4 = pnand %p2785_p3, %p2782_p2 }
  0x2c   :  { %2790 = shalt.err (!%p2787_p4)
}
  0x2d   :  { %s2791_s0 = scalar_lea.vmem %s48_s29, 4096  ;;  %p2796_p6 = scmp.lt.s32.totalorder %s48_s29, %s48_s29 }
  0x2e   :  { %p2792_p5 = scmp.ne.s32.totalorder %s48_s29, %s2791_s0  ;;  %p2797_p7 = scmp.lt.s32.totalorder %s2791_s0, %s2791_s0 }
  0x30   :  { %p2798_p8 = por %p2797_p7, %p2796_p6 }
  0x32   :  { %p2799_p9 = pnand %p2798_p8, %p2792_p5 }
  0x34   :  { %2802 = shalt.err (!%p2799_p9)
}
  0x35   :  { %53 = dma.hbm_to_vmem [thread:$0]  %s3529_s3, 4096, %s48_s29, [#allocation6], %s2856_s11, %s2856_s11, %s2857_s12  }
  0x36   :  { %s2803_s22 = scalar_lea.hbm %s3531_s5, 4096 }
  0x37   :  { %p2804_p10 = scmp.ne.s32.totalorder %s3531_s5, %s2803_s22  ;;  %p2807_p11 = scmp.lt.u32.totalorder %s2803_s22, %s3531_s5 }
  0x39   :  { %p2809_p12 = pnand %p2807_p11, %p2804_p10 }
  0x3b   :  { %2812 = shalt.err (!%p2809_p12)
}
  0x3c   :  { %s2813_s26 = scalar_lea.vmem %s2934_s8, 4096  ;;  %p2818_p0 = scmp.lt.s32.totalorder %s2934_s8, %s2934_s8 }
  0x3d   :  { %p2814_p13 = scmp.ne.s32.totalorder %s2934_s8, %s2813_s26  ;;  %p2819_p1 = scmp.lt.s32.totalorder %s2813_s26, %s2813_s26 }
  0x3f   :  { %p2820_p2 = por %p2819_p1, %p2818_p0 }
  0x41   :  { %p2821_p3 = pnand %p2820_p2, %p2814_p13 }
  0x43   :  { %2824 = shalt.err (!%p2821_p3)
}
  0x44   :  { %67 = dma.hbm_to_vmem [thread:$0]  %s3531_s5, 4096, %s2934_s8, [#allocation9], %s2856_s11, %s2856_s11, %s2857_s12  }
  0x45   :  { %2847 = dma.done.wait [#allocation3], 4096  }
  0x46   :  { %2848 = vsyncadd [#allocation3], 4294963200 }
  0x47   :  { %2849 = dma.done.wait [#allocation6], 6144  }
  0x48   :  { %2850 = vsyncadd [#allocation6], 4294961152 }
  0x49   :  { %2851 = dma.done.wait [#allocation9], 4096  }
  0x4a   :  { %2852 = vsyncadd [#allocation9], 4294963200  ;;  %v2863_v0 = vmov 0   ;;  %v2585_v1 = vld [vmem:[#allocation5 + $0x4] ss:$8 sps:$4 sm:$0xff]   ;;  %v2611_v28 = vld [vmem:[#allocation2 + $0x10] sm:$0xff]  }
  0x4b   :  { %479 = vmatprep.mubr.bf16.mxu0 %v2863_v0  ;;  %639 = vmatprep.mubr.bf16.mxu1 %v2863_v0  ;;  %v2587_v2 = vld [vmem:[#allocation5] ss:$8 sps:$4 sm:$0xff]   ;;  %v2588_v3 = vld [vmem:[#allocation5 + $0x14] ss:$8 sps:$4 sm:$0xff]   ;;  %v2590_v4 = vld [vmem:[#allocation5 + $0x10] ss:$8 sps:$4 sm:$0xff]  }
  0x4c   :  { %447 = vmatprep.subr.bf16.mxu0 %v2585_v1  ;;  %2557 = vmatprep.subr.bf16.mxu1 %v2585_v1  ;;  %v2591_v5 = vld [vmem:[#allocation5 + $0x24] ss:$8 sps:$4 sm:$0xff]   ;;  %v2593_v6 = vld [vmem:[#allocation5 + $0x20] ss:$8 sps:$4 sm:$0xff]   ;;  %v2594_v7 = vld [vmem:[#allocation5 + $0x34] ss:$8 sps:$4 sm:$0xff]  }
  0x4d   :  { %448 = vmatpush1.bf16.msra.mxu0 %v2587_v2  ;;  %2565 = vmatpush1.bf16.msra.mxu1 %v2587_v2  ;;  %v2596_v8 = vld [vmem:[#allocation5 + $0x30] ss:$8 sps:$4 sm:$0xff]   ;;  %v2597_v9 = vld [vmem:[#allocation5 + $0x44] ss:$8 sps:$4 sm:$0xff]   ;;  %v2599_v10 = vld [vmem:[#allocation5 + $0x40] ss:$8 sps:$4 sm:$0xff]  }
  0x4e   :  { %449 = vmatprep.subr.bf16.mxu0 %v2588_v3  ;;  %2558 = vmatprep.subr.bf16.mxu1 %v2588_v3  ;;  %v2600_v11 = vld [vmem:[#allocation5 + $0x54] ss:$8 sps:$4 sm:$0xff]   ;;  %v2602_v12 = vld [vmem:[#allocation5 + $0x50] ss:$8 sps:$4 sm:$0xff]   ;;  %v2603_v13 = vld [vmem:[#allocation5 + $0x64] ss:$8 sps:$4 sm:$0xff]  }
  0x4f   :  { %v2605_v14 = vld [vmem:[#allocation5 + $0x60] ss:$8 sps:$4 sm:$0xff]   ;;  %v2606_v15 = vld [vmem:[#allocation5 + $0x74] ss:$8 sps:$4 sm:$0xff]   ;;  %v2608_v16 = vld [vmem:[#allocation5 + $0x70] ss:$8 sps:$4 sm:$0xff]  }
  0x50   :  { %v2624_v17 = vld [vmem:[#allocation7 + $0x4] ss:$8 sps:$4 sm:$0xff]   ;;  %v2622_v20 = vld [vmem:[#allocation7] ss:$8 sps:$4 sm:$0xff]   ;;  %v2629_v21 = vld [vmem:[#allocation7 + $0x14] ss:$8 sps:$4 sm:$0xff]  }
  0x51   :  { %450 = vmatpush1.bf16.msra.mxu0 %v2590_v4  ;;  %2566 = vmatpush1.bf16.msra.mxu1 %v2590_v4  ;;  %v2609_v18 = vld [vmem:[#allocation2] sm:$0xff]   ;;  %v2627_v22 = vld [vmem:[#allocation7 + $0x10] ss:$8 sps:$4 sm:$0xff]   ;;  %v2610_v24 = vld [vmem:[#allocation2 + $0x8] sm:$0xff]  }
  0x52   :  { %451 = vmatprep.subr.bf16.mxu0 %v2591_v5  ;;  %2559 = vmatprep.subr.bf16.mxu1 %v2591_v5  ;;  %v2621_v19 = vld [vmem:[#allocation2 + $0x80] sm:$0xff]   ;;  %v2626_v25 = vld [vmem:[#allocation2 + $0x88] sm:$0xff]   ;;  %v2639_v27 = vld [vmem:[#allocation7 + $0x34] ss:$8 sps:$4 sm:$0xff]  }
  0x53   :  { %v2634_v23 = vld [vmem:[#allocation7 + $0x24] ss:$8 sps:$4 sm:$0xff]   ;;  %v2632_v26 = vld [vmem:[#allocation7 + $0x20] ss:$8 sps:$4 sm:$0xff]   ;;  %v2637_v29 = vld [vmem:[#allocation7 + $0x30] ss:$8 sps:$4 sm:$0xff]  }
  0x54   :  { %v2644_v30 = vld [vmem:[#allocation7 + $0x44] ss:$8 sps:$4 sm:$0xff]   ;;  %v2631_v31 = vld [vmem:[#allocation2 + $0x90] sm:$0xff]   ;;  %v2642_v32 = vld [vmem:[#allocation7 + $0x40] ss:$8 sps:$4 sm:$0xff]  }
  0x55   :  { %452 = vmatpush1.bf16.msra.mxu0 %v2593_v6  ;;  %2567 = vmatpush1.bf16.msra.mxu1 %v2593_v6  ;;  %v2648_v33 = vld [vmem:[#allocation7 + $0x54] ss:$8 sps:$4 sm:$0xff]   ;;  %v2646_v34 = vld [vmem:[#allocation7 + $0x50] ss:$8 sps:$4 sm:$0xff]   ;;  %v2652_v35 = vld [vmem:[#allocation7 + $0x64] ss:$8 sps:$4 sm:$0xff]  }
  0x56   :  { %453 = vmatprep.subr.bf16.mxu0 %v2594_v7  ;;  %2560 = vmatprep.subr.bf16.mxu1 %v2594_v7  ;;  %v2612_v36 = vld [vmem:[#allocation2 + $0x18] sm:$0xff]   ;;  %v2650_v38 = vld [vmem:[#allocation7 + $0x60] ss:$8 sps:$4 sm:$0xff]   ;;  %v2660_v43 = vld [vmem:[#allocation7 + $0x84] ss:$8 sps:$4 sm:$0xff]  }
  0x57   :  { %v2636_v37 = vld [vmem:[#allocation2 + $0x98] sm:$0xff]   ;;  %v2613_v41 = vld [vmem:[#allocation2 + $0x20] sm:$0xff]   ;;  %v2614_v48 = vld [vmem:[#allocation2 + $0x28] sm:$0xff]  }
  0x58   :  { %v2656_v39 = vld [vmem:[#allocation7 + $0x74] ss:$8 sps:$4 sm:$0xff]   ;;  %v2654_v40 = vld [vmem:[#allocation7 + $0x70] ss:$8 sps:$4 sm:$0xff]   ;;  %v2641_v42 = vld [vmem:[#allocation2 + $0xa0] sm:$0xff]  }
  0x59   :  { %454 = vmatpush1.bf16.msra.mxu0 %v2596_v8  ;;  %2568 = vmatpush1.bf16.msra.mxu1 %v2596_v8  ;;  %v2658_v44 = vld [vmem:[#allocation7 + $0x80] ss:$8 sps:$4 sm:$0xff]   ;;  %v2664_v45 = vld [vmem:[#allocation7 + $0x94] ss:$8 sps:$4 sm:$0xff]   ;;  %v2662_v46 = vld [vmem:[#allocation7 + $0x90] ss:$8 sps:$4 sm:$0xff]  }
  0x5a   :  { %455 = vmatprep.subr.bf16.mxu0 %v2597_v9  ;;  %2561 = vmatprep.subr.bf16.mxu1 %v2597_v9  ;;  %v2668_v47 = vld [vmem:[#allocation7 + $0xa4] ss:$8 sps:$4 sm:$0xff]   ;;  %v2666_v50 = vld [vmem:[#allocation7 + $0xa0] ss:$8 sps:$4 sm:$0xff]   ;;  %v2672_v51 = vld [vmem:[#allocation7 + $0xb4] ss:$8 sps:$4 sm:$0xff]  }
  0x5b   :  { %v2645_v49 = vld [vmem:[#allocation2 + $0xa8] sm:$0xff]   ;;  %v2670_v52 = vld [vmem:[#allocation7 + $0xb0] ss:$8 sps:$4 sm:$0xff]   ;;  %v2680_v57 = vld [vmem:[#allocation7 + $0xd4] ss:$8 sps:$4 sm:$0xff]  }
  0x5c   :  { %v2676_v53 = vld [vmem:[#allocation7 + $0xc4] ss:$8 sps:$4 sm:$0xff]   ;;  %v2615_v54 = vld [vmem:[#allocation2 + $0x30] sm:$0xff]   ;;  %v2674_v56 = vld [vmem:[#allocation7 + $0xc0] ss:$8 sps:$4 sm:$0xff]  }
  0x5d   :  { %456 = vmatpush1.bf16.msra.mxu0 %v2599_v10  ;;  %2569 = vmatpush1.bf16.msra.mxu1 %v2599_v10  ;;  %v2649_v55 = vld [vmem:[#allocation2 + $0xb0] sm:$0xff]   ;;  %v2684_v59 = vld [vmem:[#allocation7 + $0xe4] ss:$8 sps:$4 sm:$0xff]   ;;  %v2616_v60 = vld [vmem:[#allocation2 + $0x38] sm:$0xff]  }
  0x5e   :  { %457 = vmatprep.subr.bf16.mxu0 %v2600_v11  ;;  %2562 = vmatprep.subr.bf16.mxu1 %v2600_v11  ;;  %v2678_v58 = vld [vmem:[#allocation7 + $0xd0] ss:$8 sps:$4 sm:$0xff]   ;;  %v2682_v62 = vld [vmem:[#allocation7 + $0xe0] ss:$8 sps:$4 sm:$0xff]   ;;  %v2688_v8 = vld [vmem:[#allocation7 + $0xf4] ss:$8 sps:$4 sm:$0xff]  }
  0x5f   :  { %v2653_v61 = vld [vmem:[#allocation2 + $0xb8] sm:$0xff]   ;;  %v2617_v63 = vld [vmem:[#allocation2 + $0x40] sm:$0xff]   ;;  %v2618_v2 = vld [vmem:[#allocation2 + $0x48] sm:$0xff]  }
  0x60   :  { %v2657_v1 = vld [vmem:[#allocation2 + $0xc0] sm:$0xff]   ;;  %v2661_v3 = vld [vmem:[#allocation2 + $0xc8] sm:$0xff]   ;;  %v2619_v4 = vld [vmem:[#allocation2 + $0x50] sm:$0xff]  }
  0x61   :  { %458 = vmatpush1.bf16.msra.mxu0 %v2602_v12  ;;  %2570 = vmatpush1.bf16.msra.mxu1 %v2602_v12  ;;  %v2665_v5 = vld [vmem:[#allocation2 + $0xd0] sm:$0xff]   ;;  %v2620_v6 = vld [vmem:[#allocation2 + $0x58] sm:$0xff]   ;;  %v2625_v10 = vld [vmem:[#allocation2 + $0x60] sm:$0xff]  }
  0x62   :  { %459 = vmatprep.subr.bf16.mxu0 %v2603_v13  ;;  %2563 = vmatprep.subr.bf16.mxu1 %v2603_v13  ;;  %v2669_v7 = vld [vmem:[#allocation2 + $0xd8] sm:$0xff]   ;;  %v2673_v11 = vld [vmem:[#allocation2 + $0xe0] sm:$0xff]   ;;  %v2630_v12 = vld [vmem:[#allocation2 + $0x68] sm:$0xff]  }
  0x63   :  { %v2686_v9 = vld [vmem:[#allocation7 + $0xf0] ss:$8 sps:$4 sm:$0xff]   ;;  %v2677_v13 = vld [vmem:[#allocation2 + $0xe8] sm:$0xff]  }
  0x65   :  { %460 = vmatpush1.bf16.msra.mxu0 %v2605_v14  ;;  %2571 = vmatpush1.bf16.msra.mxu1 %v2605_v14  ;;  %v2635_v14 = vld [vmem:[#allocation2 + $0x70] sm:$0xff]  }
  0x66   :  { %461 = vmatprep.subr.bf16.mxu0 %v2606_v15  ;;  %2564 = vmatprep.subr.bf16.mxu1 %v2606_v15  ;;  %v2681_v15 = vld [vmem:[#allocation2 + $0xf0] sm:$0xff]  }
  0x69   :  { %462 = vmatpush1.bf16.msra.mxu0 %v2608_v16  ;;  %2572 = vmatpush1.bf16.msra.mxu1 %v2608_v16  ;;  %v2640_v16 = vld [vmem:[#allocation2 + $0x78] sm:$0xff]  }
  0x6a   :  { %1196 = vmatprep.subr.bf16.mxu1 %v2624_v17  ;;  %v2685_v17 = vld [vmem:[#allocation2 + $0xf8] sm:$0xff]  }
  0x6c   :  { %480 = vmatmul.mubr.bf16.vlgmr.msra.gmra.mrb[0].mxu0 %v2609_v18  ;;  %640 = vmatmul.mubr.bf16.vlgmr.msra.gmra.mrb[0].mxu1 %v2621_v19  ;;  %v2689_v18 = vld [vmem:[#allocation8] ss:$8 sps:$4 sm:$0xff]   ;;  %v2691_v19 = vld [vmem:[#allocation8 + $0x4] ss:$8 sps:$4 sm:$0xff]  }
  0x6d   :  { %489 = vmatprep.mubr.bf16.mxu0 %v2863_v0  ;;  %1197 = vmatpush1.bf16.msra.mxu1 %v2622_v20  ;;  %v165_v20 = vlaneseq }
  0x6e   :  { %649 = vmatprep.mubr.bf16.mxu1 %v2863_v0  ;;  %1198 = vmatprep.subr.bf16.mxu1 %v2629_v21  ;;  %v2692_v21 = vld [vmem:[#allocation8 + $0x10] ss:$8 sps:$4 sm:$0xff]  }
  0x6f   :  { %1945 = vmatprep.subr.bf16.mxu0 %v2691_v19 }
  0x70   :  { %1946 = vmatpush1.bf16.msra.mxu0 %v2689_v18  ;;  %v2706_v18 = vld [vmem:[#allocation8 + $0x54] ss:$8 sps:$4 sm:$0xff]  }
  0x71   :  { %1199 = vmatpush1.bf16.msra.mxu1 %v2627_v22  ;;  %v2694_v22 = vld [vmem:[#allocation8 + $0x14] ss:$8 sps:$4 sm:$0xff]  }
  0x72   :  { %1200 = vmatprep.subr.bf16.mxu1 %v2634_v23  ;;  %v166_v23 = vshrl.u32 %v165_v20, 7  ;;  %1947 = vmatprep.subr.bf16.mxu0 %v2694_v22 }
  0x74   :  { %490 = vmatmul.mubr.bf16.gmra.mrb[4].mxu0 %v2610_v24  ;;  %650 = vmatmul.mubr.bf16.gmra.mrb[4].mxu1 %v2626_v25  ;;  %v3003_v24 = vsub.s32 0, %v166_v23  ;;  %v3008_v25 = vsub.s32 1, %v166_v23 }
  0x75   :  { %499 = vmatprep.mubr.bf16.mxu0 %v2863_v0  ;;  %659 = vmatprep.mubr.bf16.mxu1 %v2863_v0 }
  0x76   :  { %1201 = vmatpush1.bf16.msra.mxu1 %v2632_v26  ;;  %1948 = vmatpush1.bf16.msra.mxu0 %v2692_v21  ;;  %v2695_v26 = vld [vmem:[#allocation8 + $0x20] ss:$8 sps:$4 sm:$0xff]  }
  0x77   :  { %1202 = vmatprep.subr.bf16.mxu1 %v2639_v27  ;;  %v2697_v27 = vld [vmem:[#allocation8 + $0x24] ss:$8 sps:$4 sm:$0xff]  }
  0x78   :  { %1949 = vmatprep.subr.bf16.mxu0 %v2697_v27 }
  0x7a   :  { %1203 = vmatpush1.bf16.msra.mxu1 %v2637_v29  ;;  %1950 = vmatpush1.bf16.msra.mxu0 %v2695_v26 }
  0x7b   :  { %1204 = vmatprep.subr.bf16.mxu1 %v2644_v30 }
  0x7c   :  { %500 = vmatmul.mubr.bf16.gmra.mrb[8].mxu0 %v2611_v28  ;;  %660 = vmatmul.mubr.bf16.gmra.mrb[8].mxu1 %v2631_v31 }
  0x7d   :  { %509 = vmatprep.mubr.bf16.mxu0 %v2863_v0  ;;  %669 = vmatprep.mubr.bf16.mxu1 %v2863_v0 }
  0x7e   :  { %1205 = vmatpush1.bf16.msra.mxu1 %v2642_v32  ;;  %v2698_v32 = vld [vmem:[#allocation8 + $0x30] ss:$8 sps:$4 sm:$0xff]  }
  0x7f   :  { %1206 = vmatprep.subr.bf16.mxu1 %v2648_v33  ;;  %v2700_v33 = vld [vmem:[#allocation8 + $0x34] ss:$8 sps:$4 sm:$0xff]  }
  0x80   :  { %1951 = vmatprep.subr.bf16.mxu0 %v2700_v33 }
  0x81   :  { %1952 = vmatpush1.bf16.msra.mxu0 %v2698_v32 }
  0x82   :  { %1207 = vmatpush1.bf16.msra.mxu1 %v2646_v34 }
  0x83   :  { %1208 = vmatprep.subr.bf16.mxu1 %v2652_v35 }
  0x84   :  { %510 = vmatmul.mubr.bf16.gmra.mrb[12].mxu0 %v2612_v36  ;;  %670 = vmatmul.mubr.bf16.gmra.mrb[12].mxu1 %v2636_v37 }
  0x85   :  { %519 = vmatprep.mubr.bf16.mxu0 %v2863_v0  ;;  %679 = vmatprep.mubr.bf16.mxu1 %v2863_v0 }
  0x86   :  { %1209 = vmatpush1.bf16.msra.mxu1 %v2650_v38 }
  0x87   :  { %1210 = vmatprep.subr.bf16.mxu1 %v2656_v39 }
  0x8a   :  { %1211 = vmatpush1.bf16.msra.mxu1 %v2654_v40 }
  0x8b   :  { %1212 = vmatprep.subr.bf16.mxu1 %v2660_v43 }
  0x8c   :  { %520 = vmatmul.mubr.bf16.gmra.mrb[16].mxu0 %v2613_v41  ;;  %680 = vmatmul.mubr.bf16.gmra.mrb[16].mxu1 %v2641_v42 }
  0x8d   :  { %529 = vmatprep.mubr.bf16.mxu0 %v2863_v0  ;;  %689 = vmatprep.mubr.bf16.mxu1 %v2863_v0 }
  0x8e   :  { %1213 = vmatpush1.bf16.msra.mxu1 %v2658_v44 }
  0x8f   :  { %1214 = vmatprep.subr.bf16.mxu1 %v2664_v45 }
  0x92   :  { %1215 = vmatpush1.bf16.msra.mxu1 %v2662_v46 }
  0x93   :  { %1216 = vmatprep.subr.bf16.mxu1 %v2668_v47 }
  0x94   :  { %530 = vmatmul.mubr.bf16.gmra.mrb[20].mxu0 %v2614_v48  ;;  %690 = vmatmul.mubr.bf16.gmra.mrb[20].mxu1 %v2645_v49 }
  0x95   :  { %539 = vmatprep.mubr.bf16.mxu0 %v2863_v0  ;;  %699 = vmatprep.mubr.bf16.mxu1 %v2863_v0 }
  0x96   :  { %1217 = vmatpush1.bf16.msra.mxu1 %v2666_v50  ;;  %v2701_v50 = vld [vmem:[#allocation8 + $0x40] ss:$8 sps:$4 sm:$0xff]  }
  0x97   :  { %1218 = vmatprep.subr.bf16.mxu1 %v2672_v51  ;;  %v2703_v51 = vld [vmem:[#allocation8 + $0x44] ss:$8 sps:$4 sm:$0xff]  }
  0x98   :  { %1953 = vmatprep.subr.bf16.mxu0 %v2703_v51  ;;  %v2709_v51 = vld [vmem:[#allocation8 + $0x64] ss:$8 sps:$4 sm:$0xff]  }
  0x99   :  { %1954 = vmatpush1.bf16.msra.mxu0 %v2701_v50  ;;  %v2707_v50 = vld [vmem:[#allocation8 + $0x60] ss:$8 sps:$4 sm:$0xff]  }
  0x9a   :  { %1219 = vmatpush1.bf16.msra.mxu1 %v2670_v52  ;;  %1955 = vmatprep.subr.bf16.mxu0 %v2706_v18 }
  0x9b   :  { %1220 = vmatprep.subr.bf16.mxu1 %v2676_v53 }
  0x9c   :  { %540 = vmatmul.mubr.bf16.gmra.mrb[24].mxu0 %v2615_v54  ;;  %700 = vmatmul.mubr.bf16.gmra.mrb[24].mxu1 %v2649_v55 }
  0x9d   :  { %549 = vmatprep.mubr.bf16.mxu0 %v2863_v0  ;;  %709 = vmatprep.mubr.bf16.mxu1 %v2863_v0 }
  0x9e   :  { %1221 = vmatpush1.bf16.msra.mxu1 %v2674_v56 }
  0x9f   :  { %1222 = vmatprep.subr.bf16.mxu1 %v2680_v57 }
  0xa2   :  { %1223 = vmatpush1.bf16.msra.mxu1 %v2678_v58 }
  0xa3   :  { %1224 = vmatprep.subr.bf16.mxu1 %v2684_v59 }
  0xa4   :  { %550 = vmatmul.mubr.bf16.gmra.mrb[28].mxu0 %v2616_v60  ;;  %710 = vmatmul.mubr.bf16.gmra.mrb[28].mxu1 %v2653_v61 }
  0xa5   :  { %559 = vmatprep.mubr.bf16.mxu0 %v2863_v0  ;;  %719 = vmatprep.mubr.bf16.mxu1 %v2863_v0 }
  0xa6   :  { %1225 = vmatpush1.bf16.msra.mxu1 %v2682_v62 }
  0xa7   :  { %1226 = vmatprep.subr.bf16.mxu1 %v2688_v8 }
  0xaa   :  { %1227 = vmatpush1.bf16.msra.mxu1 %v2686_v9 }
  0xac   :  { %560 = vmatmul.mubr.bf16.gmra.mrb[32].mxu0 %v2617_v63  ;;  %720 = vmatmul.mubr.bf16.gmra.mrb[32].mxu1 %v2657_v1 }
  0xad   :  { %569 = vmatprep.mubr.bf16.mxu0 %v2863_v0  ;;  %729 = vmatprep.mubr.bf16.mxu1 %v2863_v0 }
  0xb4   :  { %570 = vmatmul.mubr.bf16.gmra.mrb[36].mxu0 %v2618_v2  ;;  %730 = vmatmul.mubr.bf16.gmra.mrb[36].mxu1 %v2661_v3 }
  0xb5   :  { %579 = vmatprep.mubr.bf16.mxu0 %v2863_v0  ;;  %739 = vmatprep.mubr.bf16.mxu1 %v2863_v0 }
  0xbc   :  { %580 = vmatmul.mubr.bf16.gmra.mrb[40].mxu0 %v2619_v4  ;;  %740 = vmatmul.mubr.bf16.gmra.mrb[40].mxu1 %v2665_v5 }
  0xbd   :  { %589 = vmatprep.mubr.bf16.mxu0 %v2863_v0  ;;  %749 = vmatprep.mubr.bf16.mxu1 %v2863_v0 }
  0xc4   :  { %590 = vmatmul.mubr.bf16.gmra.mrb[44].mxu0 %v2620_v6  ;;  %750 = vmatmul.mubr.bf16.gmra.mrb[44].mxu1 %v2669_v7 }
  0xc5   :  { %599 = vmatprep.mubr.bf16.mxu0 %v2863_v0  ;;  %759 = vmatprep.mubr.bf16.mxu1 %v2863_v0 }
  0xcc   :  { %600 = vmatmul.mubr.bf16.gmra.mrb[48].mxu0 %v2625_v10  ;;  %760 = vmatmul.mubr.bf16.gmra.mrb[48].mxu1 %v2673_v11 }
  0xcd   :  { %609 = vmatprep.mubr.bf16.mxu0 %v2863_v0  ;;  %769 = vmatprep.mubr.bf16.mxu1 %v2863_v0 }
  0xd4   :  { %610 = vmatmul.mubr.bf16.gmra.mrb[52].mxu0 %v2630_v12  ;;  %770 = vmatmul.mubr.bf16.gmra.mrb[52].mxu1 %v2677_v13 }
  0xd5   :  { %619 = vmatprep.mubr.bf16.mxu0 %v2863_v0  ;;  %779 = vmatprep.mubr.bf16.mxu1 %v2863_v0 }
  0xdc   :  { %620 = vmatmul.mubr.bf16.gmra.mrb[56].mxu0 %v2635_v14  ;;  %780 = vmatmul.mubr.bf16.gmra.mrb[56].mxu1 %v2681_v15 }
  0xdd   :  { %629 = vmatprep.mubr.bf16.mxu0 %v2863_v0  ;;  %789 = vmatprep.mubr.bf16.mxu1 %v2863_v0  ;;  %v163_v0 = vld [vmem:[%s3528_s2] sm:$0x3] }
  0xde   :  { %v3011_v28 = vrot.slane %v163_v0, %v3003_v24  ;;  %v3014_v29 = vrot.slane %v163_v0, %v3008_v25 }
  0xe4   :  { %630 = vmatmul.mubr.bf16.gmra.mrb[60].mxu0 %v2640_v16  ;;  %790 = vmatmul.mubr.bf16.gmra.mrb[60].mxu1 %v2685_v17  ;;  %v2704_v17 = vld [vmem:[#allocation8 + $0x50] ss:$8 sps:$4 sm:$0xff]  }
  0xe5   :  { %1956 = vmatpush1.bf16.msra.mxu0 %v2704_v17 }
  0xe6   :  { %1957 = vmatprep.subr.bf16.mxu0 %v2709_v51 }
  0xe9   :  { %1958 = vmatpush1.bf16.msra.mxu0 %v2707_v50 }
 0x13f   :  { %v481_v30 = vpop.f32.mrb[0].mxu0  ;;  %v641_v31 = vpop.f32.mrb[0].mxu1 }
 0x140   :  { %v482_v34 = vadd.f32 %v481_v30, %v3011_v28  ;;  %v483_v35 = vpop.f32.mrb[1].mxu0  ;;  %v642_v36 = vadd.f32 %v641_v31, %v3011_v28  ;;  %v643_v37 = vpop.f32.mrb[1].mxu1 }
 0x141   :  { %v484_v38 = vadd.f32 %v483_v35, %v3014_v29  ;;  %v485_v39 = vpop.f32.mrb[2].mxu0  ;;  %v644_v40 = vadd.f32 %v643_v37, %v3014_v29  ;;  %v645_v41 = vpop.f32.mrb[2].mxu1 }
 0x142   :  { %v486_v42 = vadd.f32 %v485_v39, %v3011_v28  ;;  %v487_v43 = vpop.f32.mrb[3].mxu0  ;;  %v864_v44 = vmax.f32 %v642_v36, 0.0  ;;  %v646_v45 = vadd.f32 %v645_v41, %v3011_v28  ;;  %v647_v46 = vpop.f32.mrb[3].mxu1  ;;  %v800_v52 = vmax.f32 %v482_v34, 0.0 }
 0x143   :  { %v488_v47 = vadd.f32 %v487_v43, %v3014_v29  ;;  %v865_v48 = vmax.f32 %v644_v40, 0.0  ;;  %v648_v49 = vadd.f32 %v647_v46, %v3014_v29  ;;  %v801_v55 = vmax.f32 %v484_v38, 0.0 }
 0x144   :  { %v802_v53 = vmax.f32 %v486_v42, 0.0  ;;  %v866_v54 = vmax.f32 %v646_v45, 0.0 }
 0x145   :  { %v803_v56 = vmax.f32 %v488_v47, 0.0  ;;  %v867_v57 = vmax.f32 %v648_v49, 0.0 }
 0x146   :  { %v928_v58 = vpack.c.bf16 %v802_v53, %v800_v52  ;;  %v3024_v59 = vpack.c.bf16 %v866_v54, %v864_v44 }
 0x147   :  { %v929_v60 = vpack.c.bf16 %v803_v56, %v801_v55  ;;  %v491_v61 = vpop.f32.mrb[4].mxu0  ;;  %v3026_v62 = vpack.c.bf16 %v867_v57, %v865_v48  ;;  %v651_v63 = vpop.f32.mrb[4].mxu1 }
 0x148   :  { %v492_v1 = vadd.f32 %v491_v61, %v3011_v28  ;;  %v493_v2 = vpop.f32.mrb[5].mxu0  ;;  %v652_v3 = vadd.f32 %v651_v63, %v3011_v28  ;;  %v653_v4 = vpop.f32.mrb[5].mxu1 }
 0x149   :  { %v494_v5 = vadd.f32 %v493_v2, %v3014_v29  ;;  %v495_v6 = vpop.f32.mrb[6].mxu0  ;;  %1228 = vmatprep.mubr.bf16.mxu1 %v929_v60  ;;  %v654_v7 = vadd.f32 %v653_v4, %v3014_v29  ;;  %v655_v8 = vpop.f32.mrb[6].mxu1 }
 0x14a   :  { %v496_v9 = vadd.f32 %v495_v6, %v3011_v28  ;;  %v497_v10 = vpop.f32.mrb[7].mxu0  ;;  %1229 = vmatmul.mubr.bf16.vlgmr.msra.gmra.mrb[64].mxu1 %v928_v58  ;;  %v868_v11 = vmax.f32 %v652_v3, 0.0  ;;  %v656_v12 = vadd.f32 %v655_v8, %v3011_v28  ;;  %v657_v13 = vpop.f32.mrb[7].mxu1  ;;  %v804_v19 = vmax.f32 %v492_v1, 0.0 }
 0x14b   :  { %v498_v14 = vadd.f32 %v497_v10, %v3014_v29  ;;  %v869_v15 = vmax.f32 %v654_v7, 0.0  ;;  %v658_v16 = vadd.f32 %v657_v13, %v3014_v29  ;;  %v805_v22 = vmax.f32 %v494_v5, 0.0 }
 0x14c   :  { %v806_v20 = vmax.f32 %v496_v9, 0.0  ;;  %v870_v21 = vmax.f32 %v656_v12, 0.0 }
 0x14d   :  { %v807_v23 = vmax.f32 %v498_v14, 0.0  ;;  %v871_v0 = vmax.f32 %v658_v16, 0.0 }
 0x14e   :  { %v930_v26 = vpack.c.bf16 %v806_v20, %v804_v19  ;;  %v3036_v27 = vpack.c.bf16 %v870_v21, %v868_v11  ;;  %v2710_v19 = vld [vmem:[#allocation8 + $0x70] ss:$8 sps:$4 sm:$0xff]   ;;  %v2712_v20 = vld [vmem:[#allocation8 + $0x74] ss:$8 sps:$4 sm:$0xff]  }
 0x14f   :  { %v931_v30 = vpack.c.bf16 %v807_v23, %v805_v22  ;;  %v501_v31 = vpop.f32.mrb[8].mxu0  ;;  %v3038_v32 = vpack.c.bf16 %v871_v0, %v869_v15  ;;  %v661_v33 = vpop.f32.mrb[8].mxu1  ;;  %1959 = vmatprep.subr.bf16.mxu0 %v2712_v20 }
 0x150   :  { %v502_v34 = vadd.f32 %v501_v31, %v3011_v28  ;;  %v503_v35 = vpop.f32.mrb[9].mxu0  ;;  %v662_v36 = vadd.f32 %v661_v33, %v3011_v28  ;;  %v663_v37 = vpop.f32.mrb[9].mxu1  ;;  %1960 = vmatpush1.bf16.msra.mxu0 %v2710_v19 }
 0x151   :  { %v504_v38 = vadd.f32 %v503_v35, %v3014_v29  ;;  %v505_v39 = vpop.f32.mrb[10].mxu0  ;;  %1238 = vmatprep.mubr.bf16.mxu1 %v931_v30  ;;  %v664_v40 = vadd.f32 %v663_v37, %v3014_v29  ;;  %v665_v41 = vpop.f32.mrb[10].mxu1 }
 0x152   :  { %v506_v42 = vadd.f32 %v505_v39, %v3011_v28  ;;  %v507_v43 = vpop.f32.mrb[11].mxu0  ;;  %1239 = vmatmul.mubr.bf16.gmra.mrb[68].mxu1 %v930_v26  ;;  %v872_v44 = vmax.f32 %v662_v36, 0.0  ;;  %v666_v45 = vadd.f32 %v665_v41, %v3011_v28  ;;  %v667_v46 = vpop.f32.mrb[11].mxu1  ;;  %v808_v52 = vmax.f32 %v502_v34, 0.0 }
 0x153   :  { %v508_v47 = vadd.f32 %v507_v43, %v3014_v29  ;;  %v873_v48 = vmax.f32 %v664_v40, 0.0  ;;  %v668_v49 = vadd.f32 %v667_v46, %v3014_v29  ;;  %v809_v55 = vmax.f32 %v504_v38, 0.0 }
 0x154   :  { %v810_v53 = vmax.f32 %v506_v42, 0.0  ;;  %v874_v54 = vmax.f32 %v666_v45, 0.0 }
 0x155   :  { %v811_v56 = vmax.f32 %v508_v47, 0.0  ;;  %v875_v57 = vmax.f32 %v668_v49, 0.0 }
 0x156   :  { %v932_v58 = vpack.c.bf16 %v810_v53, %v808_v52  ;;  %v3048_v60 = vpack.c.bf16 %v874_v54, %v872_v44  ;;  %v2713_v54 = vld [vmem:[#allocation8 + $0x80] ss:$8 sps:$4 sm:$0xff]  }
 0x157   :  { %v933_v61 = vpack.c.bf16 %v811_v56, %v809_v55  ;;  %v511_v63 = vpop.f32.mrb[12].mxu0  ;;  %v3050_v1 = vpack.c.bf16 %v875_v57, %v873_v48  ;;  %v671_v2 = vpop.f32.mrb[12].mxu1  ;;  %v2715_v55 = vld [vmem:[#allocation8 + $0x84] ss:$8 sps:$4 sm:$0xff]  }
 0x158   :  { %v512_v3 = vadd.f32 %v511_v63, %v3011_v28  ;;  %v513_v4 = vpop.f32.mrb[13].mxu0  ;;  %v672_v5 = vadd.f32 %v671_v2, %v3011_v28  ;;  %v673_v6 = vpop.f32.mrb[13].mxu1  ;;  %1961 = vmatprep.subr.bf16.mxu0 %v2715_v55 }
 0x159   :  { %v514_v7 = vadd.f32 %v513_v4, %v3014_v29  ;;  %v515_v8 = vpop.f32.mrb[14].mxu0  ;;  %1248 = vmatprep.mubr.bf16.mxu1 %v933_v61  ;;  %v674_v9 = vadd.f32 %v673_v6, %v3014_v29  ;;  %v675_v10 = vpop.f32.mrb[14].mxu1  ;;  %1962 = vmatpush1.bf16.msra.mxu0 %v2713_v54 }
 0x15a   :  { %v516_v11 = vadd.f32 %v515_v8, %v3011_v28  ;;  %v517_v12 = vpop.f32.mrb[15].mxu0  ;;  %1249 = vmatmul.mubr.bf16.gmra.mrb[72].mxu1 %v932_v58  ;;  %v876_v13 = vmax.f32 %v672_v5, 0.0  ;;  %v676_v14 = vadd.f32 %v675_v10, %v3011_v28  ;;  %v677_v15 = vpop.f32.mrb[15].mxu1  ;;  %v812_v21 = vmax.f32 %v512_v3, 0.0 }
 0x15b   :  { %v518_v16 = vadd.f32 %v517_v12, %v3014_v29  ;;  %v877_v17 = vmax.f32 %v674_v9, 0.0  ;;  %v678_v18 = vadd.f32 %v677_v15, %v3014_v29  ;;  %v813_v0 = vmax.f32 %v514_v7, 0.0 }
 0x15c   :  { %v814_v22 = vmax.f32 %v516_v11, 0.0  ;;  %v878_v23 = vmax.f32 %v676_v14, 0.0 }
 0x15d   :  { %v815_v26 = vmax.f32 %v518_v16, 0.0  ;;  %v879_v30 = vmax.f32 %v678_v18, 0.0 }
 0x15e   :  { %v934_v31 = vpack.c.bf16 %v814_v22, %v812_v21  ;;  %v3060_v33 = vpack.c.bf16 %v878_v23, %v876_v13 }
 0x15f   :  { %v935_v34 = vpack.c.bf16 %v815_v26, %v813_v0  ;;  %v521_v35 = vpop.f32.mrb[16].mxu0  ;;  %v3062_v36 = vpack.c.bf16 %v879_v30, %v877_v17  ;;  %v681_v37 = vpop.f32.mrb[16].mxu1  ;;  %v2716_v26 = vld [vmem:[#allocation8 + $0x90] ss:$8 sps:$4 sm:$0xff]   ;;  %v2718_v30 = vld [vmem:[#allocation8 + $0x94] ss:$8 sps:$4 sm:$0xff]  }
 0x160   :  { %v522_v38 = vadd.f32 %v521_v35, %v3011_v28  ;;  %v523_v39 = vpop.f32.mrb[17].mxu0  ;;  %v682_v40 = vadd.f32 %v681_v37, %v3011_v28  ;;  %v683_v41 = vpop.f32.mrb[17].mxu1  ;;  %1963 = vmatprep.subr.bf16.mxu0 %v2718_v30 }
 0x161   :  { %v524_v42 = vadd.f32 %v523_v39, %v3014_v29  ;;  %v525_v43 = vpop.f32.mrb[18].mxu0  ;;  %1258 = vmatprep.mubr.bf16.mxu1 %v935_v34  ;;  %v684_v44 = vadd.f32 %v683_v41, %v3014_v29  ;;  %v685_v45 = vpop.f32.mrb[18].mxu1  ;;  %1964 = vmatpush1.bf16.msra.mxu0 %v2716_v26 }
 0x162   :  { %v526_v46 = vadd.f32 %v525_v43, %v3011_v28  ;;  %v527_v47 = vpop.f32.mrb[19].mxu0  ;;  %1259 = vmatmul.mubr.bf16.gmra.mrb[76].mxu1 %v934_v31  ;;  %v880_v48 = vmax.f32 %v682_v40, 0.0  ;;  %v686_v49 = vadd.f32 %v685_v45, %v3011_v28  ;;  %v687_v50 = vpop.f32.mrb[19].mxu1  ;;  %v816_v56 = vmax.f32 %v522_v38, 0.0 }
 0x163   :  { %v528_v51 = vadd.f32 %v527_v47, %v3014_v29  ;;  %v881_v52 = vmax.f32 %v684_v44, 0.0  ;;  %v688_v53 = vadd.f32 %v687_v50, %v3014_v29  ;;  %v817_v61 = vmax.f32 %v524_v42, 0.0 }
 0x164   :  { %v818_v57 = vmax.f32 %v526_v46, 0.0  ;;  %v882_v58 = vmax.f32 %v686_v49, 0.0 }
 0x165   :  { %v819_v63 = vmax.f32 %v528_v51, 0.0  ;;  %v883_v2 = vmax.f32 %v688_v53, 0.0 }
 0x166   :  { %v936_v3 = vpack.c.bf16 %v818_v57, %v816_v56  ;;  %v3072_v4 = vpack.c.bf16 %v882_v58, %v880_v48 }
 0x167   :  { %v937_v5 = vpack.c.bf16 %v819_v63, %v817_v61  ;;  %v531_v6 = vpop.f32.mrb[20].mxu0  ;;  %v3074_v7 = vpack.c.bf16 %v883_v2, %v881_v52  ;;  %v691_v8 = vpop.f32.mrb[20].mxu1 }
 0x168   :  { %v532_v9 = vadd.f32 %v531_v6, %v3011_v28  ;;  %v533_v10 = vpop.f32.mrb[21].mxu0  ;;  %v692_v11 = vadd.f32 %v691_v8, %v3011_v28  ;;  %v693_v12 = vpop.f32.mrb[21].mxu1 }
 0x169   :  { %v534_v13 = vadd.f32 %v533_v10, %v3014_v29  ;;  %v535_v14 = vpop.f32.mrb[22].mxu0  ;;  %1268 = vmatprep.mubr.bf16.mxu1 %v937_v5  ;;  %v694_v15 = vadd.f32 %v693_v12, %v3014_v29  ;;  %v695_v16 = vpop.f32.mrb[22].mxu1  ;;  %v2721_v5 = vld [vmem:[#allocation8 + $0xa4] ss:$8 sps:$4 sm:$0xff]  }
 0x16a   :  { %v536_v17 = vadd.f32 %v535_v14, %v3011_v28  ;;  %v537_v18 = vpop.f32.mrb[23].mxu0  ;;  %1269 = vmatmul.mubr.bf16.gmra.mrb[80].mxu1 %v936_v3  ;;  %v884_v19 = vmax.f32 %v692_v11, 0.0  ;;  %v696_v20 = vadd.f32 %v695_v16, %v3011_v28  ;;  %v697_v21 = vpop.f32.mrb[23].mxu1  ;;  %v820_v31 = vmax.f32 %v532_v9, 0.0  ;;  %v2719_v3 = vld [vmem:[#allocation8 + $0xa0] ss:$8 sps:$4 sm:$0xff]   ;;  %1965 = vmatprep.subr.bf16.mxu0 %v2721_v5 }
 0x16b   :  { %v538_v22 = vadd.f32 %v537_v18, %v3014_v29  ;;  %v885_v23 = vmax.f32 %v694_v15, 0.0  ;;  %v698_v0 = vadd.f32 %v697_v21, %v3014_v29  ;;  %v821_v37 = vmax.f32 %v534_v13, 0.0  ;;  %1966 = vmatpush1.bf16.msra.mxu0 %v2719_v3 }
 0x16c   :  { %v822_v34 = vmax.f32 %v536_v17, 0.0  ;;  %v886_v35 = vmax.f32 %v696_v20, 0.0 }
 0x16d   :  { %v823_v38 = vmax.f32 %v538_v22, 0.0  ;;  %v887_v39 = vmax.f32 %v698_v0, 0.0 }
 0x16e   :  { %v938_v40 = vpack.c.bf16 %v822_v34, %v820_v31  ;;  %v3084_v41 = vpack.c.bf16 %v886_v35, %v884_v19 }
 0x16f   :  { %v939_v42 = vpack.c.bf16 %v823_v38, %v821_v37  ;;  %v541_v43 = vpop.f32.mrb[24].mxu0  ;;  %v3086_v44 = vpack.c.bf16 %v887_v39, %v885_v23  ;;  %v701_v45 = vpop.f32.mrb[24].mxu1 }
 0x170   :  { %v542_v46 = vadd.f32 %v541_v43, %v3011_v28  ;;  %v543_v47 = vpop.f32.mrb[25].mxu0  ;;  %v702_v48 = vadd.f32 %v701_v45, %v3011_v28  ;;  %v703_v49 = vpop.f32.mrb[25].mxu1  ;;  %v2722_v43 = vld [vmem:[#allocation8 + $0xb0] ss:$8 sps:$4 sm:$0xff]   ;;  %v2724_v45 = vld [vmem:[#allocation8 + $0xb4] ss:$8 sps:$4 sm:$0xff]  }
 0x171   :  { %v544_v50 = vadd.f32 %v543_v47, %v3014_v29  ;;  %v545_v51 = vpop.f32.mrb[26].mxu0  ;;  %1278 = vmatprep.mubr.bf16.mxu1 %v939_v42  ;;  %v704_v52 = vadd.f32 %v703_v49, %v3014_v29  ;;  %v705_v53 = vpop.f32.mrb[26].mxu1  ;;  %1967 = vmatprep.subr.bf16.mxu0 %v2724_v45 }
 0x172   :  { %v546_v54 = vadd.f32 %v545_v51, %v3011_v28  ;;  %v547_v55 = vpop.f32.mrb[27].mxu0  ;;  %1279 = vmatmul.mubr.bf16.gmra.mrb[84].mxu1 %v938_v40  ;;  %v888_v56 = vmax.f32 %v702_v48, 0.0  ;;  %v706_v57 = vadd.f32 %v705_v53, %v3011_v28  ;;  %v707_v58 = vpop.f32.mrb[27].mxu1  ;;  %v824_v6 = vmax.f32 %v542_v46, 0.0  ;;  %1968 = vmatpush1.bf16.msra.mxu0 %v2722_v43 }
 0x173   :  { %v548_v61 = vadd.f32 %v547_v55, %v3014_v29  ;;  %v889_v63 = vmax.f32 %v704_v52, 0.0  ;;  %v708_v2 = vadd.f32 %v707_v58, %v3014_v29  ;;  %v825_v10 = vmax.f32 %v544_v50, 0.0 }
 0x174   :  { %v826_v8 = vmax.f32 %v546_v54, 0.0  ;;  %v890_v9 = vmax.f32 %v706_v57, 0.0 }
 0x175   :  { %v827_v11 = vmax.f32 %v548_v61, 0.0  ;;  %v891_v12 = vmax.f32 %v708_v2, 0.0 }
 0x176   :  { %v940_v13 = vpack.c.bf16 %v826_v8, %v824_v6  ;;  %v3096_v14 = vpack.c.bf16 %v890_v9, %v888_v56 }
 0x177   :  { %v941_v15 = vpack.c.bf16 %v827_v11, %v825_v10  ;;  %v551_v16 = vpop.f32.mrb[28].mxu0  ;;  %v3098_v17 = vpack.c.bf16 %v891_v12, %v889_v63  ;;  %v711_v18 = vpop.f32.mrb[28].mxu1 }
 0x178   :  { %v552_v19 = vadd.f32 %v551_v16, %v3011_v28  ;;  %v553_v20 = vpop.f32.mrb[29].mxu0  ;;  %v712_v21 = vadd.f32 %v711_v18, %v3011_v28  ;;  %v713_v22 = vpop.f32.mrb[29].mxu1 }
 0x179   :  { %v554_v23 = vadd.f32 %v553_v20, %v3014_v29  ;;  %v555_v0 = vpop.f32.mrb[30].mxu0  ;;  %1288 = vmatprep.mubr.bf16.mxu1 %v941_v15  ;;  %v714_v26 = vadd.f32 %v713_v22, %v3014_v29  ;;  %v715_v30 = vpop.f32.mrb[30].mxu1  ;;  %v2727_v20 = vld [vmem:[#allocation8 + $0xc4] ss:$8 sps:$4 sm:$0xff]  }
 0x17a   :  { %v556_v31 = vadd.f32 %v555_v0, %v3011_v28  ;;  %v557_v34 = vpop.f32.mrb[31].mxu0  ;;  %1289 = vmatmul.mubr.bf16.gmra.mrb[88].mxu1 %v940_v13  ;;  %v892_v35 = vmax.f32 %v712_v21, 0.0  ;;  %v716_v37 = vadd.f32 %v715_v30, %v3011_v28  ;;  %v717_v38 = vpop.f32.mrb[31].mxu1  ;;  %v828_v46 = vmax.f32 %v552_v19, 0.0  ;;  %v2725_v19 = vld [vmem:[#allocation8 + $0xc0] ss:$8 sps:$4 sm:$0xff]   ;;  %1969 = vmatprep.subr.bf16.mxu0 %v2727_v20 }
 0x17b   :  { %v558_v39 = vadd.f32 %v557_v34, %v3014_v29  ;;  %v893_v40 = vmax.f32 %v714_v26, 0.0  ;;  %v718_v42 = vadd.f32 %v717_v38, %v3014_v29  ;;  %v829_v49 = vmax.f32 %v554_v23, 0.0  ;;  %1970 = vmatpush1.bf16.msra.mxu0 %v2725_v19 }
 0x17c   :  { %v830_v47 = vmax.f32 %v556_v31, 0.0  ;;  %v894_v48 = vmax.f32 %v716_v37, 0.0 }
 0x17d   :  { %v831_v50 = vmax.f32 %v558_v39, 0.0  ;;  %v895_v51 = vmax.f32 %v718_v42, 0.0 }
 0x17e   :  { %v942_v52 = vpack.c.bf16 %v830_v47, %v828_v46  ;;  %v3108_v53 = vpack.c.bf16 %v894_v48, %v892_v35 }
 0x17f   :  { %v943_v54 = vpack.c.bf16 %v831_v50, %v829_v49  ;;  %v561_v55 = vpop.f32.mrb[32].mxu0  ;;  %v3110_v56 = vpack.c.bf16 %v895_v51, %v893_v40  ;;  %v721_v57 = vpop.f32.mrb[32].mxu1 }
 0x180   :  { %v562_v58 = vadd.f32 %v561_v55, %v3011_v28  ;;  %v563_v61 = vpop.f32.mrb[33].mxu0  ;;  %v722_v63 = vadd.f32 %v721_v57, %v3011_v28  ;;  %v723_v2 = vpop.f32.mrb[33].mxu1 }
 0x181   :  { %v564_v3 = vadd.f32 %v563_v61, %v3014_v29  ;;  %v565_v5 = vpop.f32.mrb[34].mxu0  ;;  %1298 = vmatprep.mubr.bf16.mxu1 %v943_v54  ;;  %v724_v6 = vadd.f32 %v723_v2, %v3014_v29  ;;  %v725_v8 = vpop.f32.mrb[34].mxu1  ;;  %v2730_v2 = vld [vmem:[#allocation8 + $0xd4] ss:$8 sps:$4 sm:$0xff]  }
 0x182   :  { %v566_v9 = vadd.f32 %v565_v5, %v3011_v28  ;;  %v567_v10 = vpop.f32.mrb[35].mxu0  ;;  %1299 = vmatmul.mubr.bf16.gmra.mrb[92].mxu1 %v942_v52  ;;  %v896_v11 = vmax.f32 %v722_v63, 0.0  ;;  %v726_v12 = vadd.f32 %v725_v8, %v3011_v28  ;;  %v727_v13 = vpop.f32.mrb[35].mxu1  ;;  %v832_v21 = vmax.f32 %v562_v58, 0.0  ;;  %v2728_v63 = vld [vmem:[#allocation8 + $0xd0] ss:$8 sps:$4 sm:$0xff]   ;;  %1971 = vmatprep.subr.bf16.mxu0 %v2730_v2 }
 0x183   :  { %v568_v15 = vadd.f32 %v567_v10, %v3014_v29  ;;  %v897_v16 = vmax.f32 %v724_v6, 0.0  ;;  %v728_v18 = vadd.f32 %v727_v13, %v3014_v29  ;;  %v833_v0 = vmax.f32 %v564_v3, 0.0  ;;  %1972 = vmatpush1.bf16.msra.mxu0 %v2728_v63 }
 0x184   :  { %v834_v22 = vmax.f32 %v566_v9, 0.0  ;;  %v898_v23 = vmax.f32 %v726_v12, 0.0 }
 0x185   :  { %v835_v26 = vmax.f32 %v568_v15, 0.0  ;;  %v899_v30 = vmax.f32 %v728_v18, 0.0 }
 0x186   :  { %v944_v31 = vpack.c.bf16 %v834_v22, %v832_v21  ;;  %v3120_v34 = vpack.c.bf16 %v898_v23, %v896_v11 }
 0x187   :  { %v945_v35 = vpack.c.bf16 %v835_v26, %v833_v0  ;;  %v571_v37 = vpop.f32.mrb[36].mxu0  ;;  %v3122_v38 = vpack.c.bf16 %v899_v30, %v897_v16  ;;  %v731_v39 = vpop.f32.mrb[36].mxu1 }
 0x188   :  { %v572_v40 = vadd.f32 %v571_v37, %v3011_v28  ;;  %v573_v42 = vpop.f32.mrb[37].mxu0  ;;  %v732_v43 = vadd.f32 %v731_v39, %v3011_v28  ;;  %v733_v45 = vpop.f32.mrb[37].mxu1 }
 0x189   :  { %v574_v46 = vadd.f32 %v573_v42, %v3014_v29  ;;  %v575_v47 = vpop.f32.mrb[38].mxu0  ;;  %1308 = vmatprep.mubr.bf16.mxu1 %v945_v35  ;;  %v734_v48 = vadd.f32 %v733_v45, %v3014_v29  ;;  %v735_v49 = vpop.f32.mrb[38].mxu1 }
 0x18a   :  { %v576_v50 = vadd.f32 %v575_v47, %v3011_v28  ;;  %v577_v51 = vpop.f32.mrb[39].mxu0  ;;  %1309 = vmatmul.mubr.bf16.gmra.mrb[96].mxu1 %v944_v31  ;;  %v900_v52 = vmax.f32 %v732_v43, 0.0  ;;  %v736_v54 = vadd.f32 %v735_v49, %v3011_v28  ;;  %v737_v55 = vpop.f32.mrb[39].mxu1  ;;  %v836_v3 = vmax.f32 %v572_v40, 0.0  ;;  %v2733_v47 = vld [vmem:[#allocation8 + $0xe4] ss:$8 sps:$4 sm:$0xff]  }
 0x18b   :  { %v578_v57 = vadd.f32 %v577_v51, %v3014_v29  ;;  %v901_v58 = vmax.f32 %v734_v48, 0.0  ;;  %v738_v61 = vadd.f32 %v737_v55, %v3014_v29  ;;  %v837_v8 = vmax.f32 %v574_v46, 0.0  ;;  %v2731_v46 = vld [vmem:[#allocation8 + $0xe0] ss:$8 sps:$4 sm:$0xff]   ;;  %1973 = vmatprep.subr.bf16.mxu0 %v2733_v47 }
 0x18c   :  { %v838_v5 = vmax.f32 %v576_v50, 0.0  ;;  %v902_v6 = vmax.f32 %v736_v54, 0.0  ;;  %1974 = vmatpush1.bf16.msra.mxu0 %v2731_v46 }
 0x18d   :  { %v839_v9 = vmax.f32 %v578_v57, 0.0  ;;  %v903_v10 = vmax.f32 %v738_v61, 0.0 }
 0x18e   :  { %v946_v11 = vpack.c.bf16 %v838_v5, %v836_v3  ;;  %v3132_v12 = vpack.c.bf16 %v902_v6, %v900_v52 }
 0x18f   :  { %v947_v13 = vpack.c.bf16 %v839_v9, %v837_v8  ;;  %v581_v15 = vpop.f32.mrb[40].mxu0  ;;  %v3134_v16 = vpack.c.bf16 %v903_v10, %v901_v58  ;;  %v741_v18 = vpop.f32.mrb[40].mxu1 }
 0x190   :  { %v582_v19 = vadd.f32 %v581_v15, %v3011_v28  ;;  %v583_v20 = vpop.f32.mrb[41].mxu0  ;;  %v742_v21 = vadd.f32 %v741_v18, %v3011_v28  ;;  %v743_v22 = vpop.f32.mrb[41].mxu1 }
 0x191   :  { %v584_v23 = vadd.f32 %v583_v20, %v3014_v29  ;;  %v585_v0 = vpop.f32.mrb[42].mxu0  ;;  %1318 = vmatprep.mubr.bf16.mxu1 %v947_v13  ;;  %v744_v26 = vadd.f32 %v743_v22, %v3014_v29  ;;  %v745_v30 = vpop.f32.mrb[42].mxu1 }
 0x192   :  { %v586_v31 = vadd.f32 %v585_v0, %v3011_v28  ;;  %v587_v35 = vpop.f32.mrb[43].mxu0  ;;  %1319 = vmatmul.mubr.bf16.gmra.mrb[100].mxu1 %v946_v11  ;;  %v904_v37 = vmax.f32 %v742_v21, 0.0  ;;  %v746_v39 = vadd.f32 %v745_v30, %v3011_v28  ;;  %v747_v40 = vpop.f32.mrb[43].mxu1  ;;  %v840_v48 = vmax.f32 %v582_v19, 0.0 }
 0x193   :  { %v588_v42 = vadd.f32 %v587_v35, %v3014_v29  ;;  %v905_v43 = vmax.f32 %v744_v26, 0.0  ;;  %v748_v45 = vadd.f32 %v747_v40, %v3014_v29  ;;  %v841_v51 = vmax.f32 %v584_v23, 0.0 }
 0x194   :  { %v842_v49 = vmax.f32 %v586_v31, 0.0  ;;  %v906_v50 = vmax.f32 %v746_v39, 0.0 }
 0x195   :  { %v843_v52 = vmax.f32 %v588_v42, 0.0  ;;  %v907_v54 = vmax.f32 %v748_v45, 0.0 }
 0x196   :  { %v948_v55 = vpack.c.bf16 %v842_v49, %v840_v48  ;;  %v3144_v57 = vpack.c.bf16 %v906_v50, %v904_v37 }
 0x197   :  { %v949_v58 = vpack.c.bf16 %v843_v52, %v841_v51  ;;  %v591_v61 = vpop.f32.mrb[44].mxu0  ;;  %v3146_v63 = vpack.c.bf16 %v907_v54, %v905_v43  ;;  %v751_v2 = vpop.f32.mrb[44].mxu1 }
 0x198   :  { %v592_v3 = vadd.f32 %v591_v61, %v3011_v28  ;;  %v593_v5 = vpop.f32.mrb[45].mxu0  ;;  %v752_v6 = vadd.f32 %v751_v2, %v3011_v28  ;;  %v753_v8 = vpop.f32.mrb[45].mxu1 }
 0x199   :  { %v594_v9 = vadd.f32 %v593_v5, %v3014_v29  ;;  %v595_v10 = vpop.f32.mrb[46].mxu0  ;;  %1328 = vmatprep.mubr.bf16.mxu1 %v949_v58  ;;  %v754_v11 = vadd.f32 %v753_v8, %v3014_v29  ;;  %v755_v13 = vpop.f32.mrb[46].mxu1  ;;  %v2736_v8 = vld [vmem:[#allocation8 + $0xf4] ss:$8 sps:$4 sm:$0xff]  }
 0x19a   :  { %v596_v15 = vadd.f32 %v595_v10, %v3011_v28  ;;  %v597_v18 = vpop.f32.mrb[47].mxu0  ;;  %1329 = vmatmul.mubr.bf16.gmra.mrb[104].mxu1 %v948_v55  ;;  %v908_v19 = vmax.f32 %v752_v6, 0.0  ;;  %v756_v20 = vadd.f32 %v755_v13, %v3011_v28  ;;  %v757_v21 = vpop.f32.mrb[47].mxu1  ;;  %v844_v26 = vmax.f32 %v592_v3, 0.0  ;;  %v2734_v13 = vld [vmem:[#allocation8 + $0xf0] ss:$8 sps:$4 sm:$0xff]   ;;  %1975 = vmatprep.subr.bf16.mxu0 %v2736_v8 }
 0x19b   :  { %v598_v22 = vadd.f32 %v597_v18, %v3014_v29  ;;  %v909_v23 = vmax.f32 %v754_v11, 0.0  ;;  %v758_v0 = vadd.f32 %v757_v21, %v3014_v29  ;;  %v845_v35 = vmax.f32 %v594_v9, 0.0  ;;  %1976 = vmatpush1.bf16.msra.mxu0 %v2734_v13 }
 0x19c   :  { %v846_v30 = vmax.f32 %v596_v15, 0.0  ;;  %v910_v31 = vmax.f32 %v756_v20, 0.0 }
 0x19d   :  { %v847_v37 = vmax.f32 %v598_v22, 0.0  ;;  %v911_v39 = vmax.f32 %v758_v0, 0.0 }
 0x19e   :  { %v950_v40 = vpack.c.bf16 %v846_v30, %v844_v26  ;;  %v3156_v42 = vpack.c.bf16 %v910_v31, %v908_v19 }
 0x19f   :  { %v951_v43 = vpack.c.bf16 %v847_v37, %v845_v35  ;;  %v601_v45 = vpop.f32.mrb[48].mxu0  ;;  %v3158_v46 = vpack.c.bf16 %v911_v39, %v909_v23  ;;  %v761_v47 = vpop.f32.mrb[48].mxu1 }
 0x1a0   :  { %v602_v48 = vadd.f32 %v601_v45, %v3011_v28  ;;  %v603_v49 = vpop.f32.mrb[49].mxu0  ;;  %v762_v50 = vadd.f32 %v761_v47, %v3011_v28  ;;  %v763_v51 = vpop.f32.mrb[49].mxu1 }
 0x1a1   :  { %v604_v52 = vadd.f32 %v603_v49, %v3014_v29  ;;  %v605_v54 = vpop.f32.mrb[50].mxu0  ;;  %1338 = vmatprep.mubr.bf16.mxu1 %v951_v43  ;;  %v764_v55 = vadd.f32 %v763_v51, %v3014_v29  ;;  %v765_v58 = vpop.f32.mrb[50].mxu1 }
 0x1a2   :  { %v606_v61 = vadd.f32 %v605_v54, %v3011_v28  ;;  %v607_v2 = vpop.f32.mrb[51].mxu0  ;;  %1339 = vmatmul.mubr.bf16.gmra.mrb[108].mxu1 %v950_v40  ;;  %v912_v3 = vmax.f32 %v762_v50, 0.0  ;;  %v766_v5 = vadd.f32 %v765_v58, %v3011_v28  ;;  %v767_v6 = vpop.f32.mrb[51].mxu1  ;;  %v848_v15 = vmax.f32 %v602_v48, 0.0 }
 0x1a3   :  { %v608_v9 = vadd.f32 %v607_v2, %v3014_v29  ;;  %v913_v10 = vmax.f32 %v764_v55, 0.0  ;;  %v768_v11 = vadd.f32 %v767_v6, %v3014_v29  ;;  %v849_v20 = vmax.f32 %v604_v52, 0.0 }
 0x1a4   :  { %v850_v18 = vmax.f32 %v606_v61, 0.0  ;;  %v914_v19 = vmax.f32 %v766_v5, 0.0 }
 0x1a5   :  { %v851_v21 = vmax.f32 %v608_v9, 0.0  ;;  %v915_v22 = vmax.f32 %v768_v11, 0.0 }
 0x1a6   :  { %v952_v23 = vpack.c.bf16 %v850_v18, %v848_v15  ;;  %v3168_v0 = vpack.c.bf16 %v914_v19, %v912_v3 }
 0x1a7   :  { %v953_v26 = vpack.c.bf16 %v851_v21, %v849_v20  ;;  %v611_v30 = vpop.f32.mrb[52].mxu0  ;;  %v3170_v31 = vpack.c.bf16 %v915_v22, %v913_v10  ;;  %v771_v35 = vpop.f32.mrb[52].mxu1 }
 0x1a8   :  { %v612_v37 = vadd.f32 %v611_v30, %v3011_v28  ;;  %v613_v39 = vpop.f32.mrb[53].mxu0  ;;  %v772_v40 = vadd.f32 %v771_v35, %v3011_v28  ;;  %v773_v43 = vpop.f32.mrb[53].mxu1 }
 0x1a9   :  { %v614_v45 = vadd.f32 %v613_v39, %v3014_v29  ;;  %v615_v47 = vpop.f32.mrb[54].mxu0  ;;  %1348 = vmatprep.mubr.bf16.mxu1 %v953_v26  ;;  %v774_v48 = vadd.f32 %v773_v43, %v3014_v29  ;;  %v775_v49 = vpop.f32.mrb[54].mxu1 }
 0x1aa   :  { %v616_v50 = vadd.f32 %v615_v47, %v3011_v28  ;;  %v617_v51 = vpop.f32.mrb[55].mxu0  ;;  %1349 = vmatmul.mubr.bf16.gmra.mrb[112].mxu1 %v952_v23  ;;  %v916_v52 = vmax.f32 %v772_v40, 0.0  ;;  %v776_v54 = vadd.f32 %v775_v49, %v3011_v28  ;;  %v777_v55 = vpop.f32.mrb[55].mxu1  ;;  %v852_v3 = vmax.f32 %v612_v37, 0.0 }
 0x1ab   :  { %v618_v58 = vadd.f32 %v617_v51, %v3014_v29  ;;  %v917_v61 = vmax.f32 %v774_v48, 0.0  ;;  %v778_v2 = vadd.f32 %v777_v55, %v3014_v29  ;;  %v853_v8 = vmax.f32 %v614_v45, 0.0 }
 0x1ac   :  { %v854_v5 = vmax.f32 %v616_v50, 0.0  ;;  %v918_v6 = vmax.f32 %v776_v54, 0.0 }
 0x1ad   :  { %v855_v9 = vmax.f32 %v618_v58, 0.0  ;;  %v919_v10 = vmax.f32 %v778_v2, 0.0 }
 0x1ae   :  { %v954_v11 = vpack.c.bf16 %v854_v5, %v852_v3  ;;  %v3180_v13 = vpack.c.bf16 %v918_v6, %v916_v52 }
 0x1af   :  { %v955_v15 = vpack.c.bf16 %v855_v9, %v853_v8  ;;  %v621_v18 = vpop.f32.mrb[56].mxu0  ;;  %v3182_v19 = vpack.c.bf16 %v919_v10, %v917_v61  ;;  %v781_v20 = vpop.f32.mrb[56].mxu1 }
 0x1b0   :  { %v622_v21 = vadd.f32 %v621_v18, %v3011_v28  ;;  %v623_v22 = vpop.f32.mrb[57].mxu0  ;;  %v782_v23 = vadd.f32 %v781_v20, %v3011_v28  ;;  %v783_v26 = vpop.f32.mrb[57].mxu1 }
 0x1b1   :  { %v624_v30 = vadd.f32 %v623_v22, %v3014_v29  ;;  %v625_v35 = vpop.f32.mrb[58].mxu0  ;;  %1358 = vmatprep.mubr.bf16.mxu1 %v955_v15  ;;  %v784_v37 = vadd.f32 %v783_v26, %v3014_v29  ;;  %v785_v39 = vpop.f32.mrb[58].mxu1 }
 0x1b2   :  { %v626_v40 = vadd.f32 %v625_v35, %v3011_v28  ;;  %v627_v43 = vpop.f32.mrb[59].mxu0  ;;  %1359 = vmatmul.mubr.bf16.gmra.mrb[116].mxu1 %v954_v11  ;;  %v920_v45 = vmax.f32 %v782_v23, 0.0  ;;  %v786_v47 = vadd.f32 %v785_v39, %v3011_v28  ;;  %v787_v48 = vpop.f32.mrb[59].mxu1  ;;  %v856_v52 = vmax.f32 %v622_v21, 0.0 }
 0x1b3   :  { %v628_v49 = vadd.f32 %v627_v43, %v3014_v29  ;;  %v921_v50 = vmax.f32 %v784_v37, 0.0  ;;  %v788_v51 = vadd.f32 %v787_v48, %v3014_v29  ;;  %v857_v58 = vmax.f32 %v624_v30, 0.0 }
 0x1b4   :  { %v858_v54 = vmax.f32 %v626_v40, 0.0  ;;  %v922_v55 = vmax.f32 %v786_v47, 0.0 }
 0x1b5   :  { %v859_v61 = vmax.f32 %v628_v49, 0.0  ;;  %v923_v2 = vmax.f32 %v788_v51, 0.0 }
 0x1b6   :  { %v956_v3 = vpack.c.bf16 %v858_v54, %v856_v52  ;;  %v3192_v5 = vpack.c.bf16 %v922_v55, %v920_v45 }
 0x1b7   :  { %v957_v6 = vpack.c.bf16 %v859_v61, %v857_v58  ;;  %v631_v8 = vpop.f32.mrb[60].mxu0  ;;  %v3194_v9 = vpack.c.bf16 %v923_v2, %v921_v50  ;;  %v791_v10 = vpop.f32.mrb[60].mxu1 }
 0x1b8   :  { %v632_v11 = vadd.f32 %v631_v8, %v3011_v28  ;;  %v633_v15 = vpop.f32.mrb[61].mxu0  ;;  %v792_v18 = vadd.f32 %v791_v10, %v3011_v28  ;;  %v793_v20 = vpop.f32.mrb[61].mxu1 }
 0x1b9   :  { %v634_v21 = vadd.f32 %v633_v15, %v3014_v29  ;;  %v635_v22 = vpop.f32.mrb[62].mxu0  ;;  %1368 = vmatprep.mubr.bf16.mxu1 %v957_v6  ;;  %v794_v23 = vadd.f32 %v793_v20, %v3014_v29  ;;  %v795_v26 = vpop.f32.mrb[62].mxu1 }
 0x1ba   :  { %v636_v30 = vadd.f32 %v635_v22, %v3011_v28  ;;  %v637_v35 = vpop.f32.mrb[63].mxu0  ;;  %1369 = vmatmul.mubr.bf16.gmra.mrb[120].mxu1 %v956_v3  ;;  %v924_v37 = vmax.f32 %v792_v18, 0.0  ;;  %v796_v39 = vadd.f32 %v795_v26, %v3011_v28  ;;  %v797_v40 = vpop.f32.mrb[63].mxu1  ;;  %v860_v48 = vmax.f32 %v632_v11, 0.0  ;;  %v1024_v28 = vld [vmem:[%s3530_s4] sm:$0x3] }
 0x1bb   :  { %v638_v43 = vadd.f32 %v637_v35, %v3014_v29  ;;  %v925_v45 = vmax.f32 %v794_v23, 0.0  ;;  %v798_v47 = vadd.f32 %v797_v40, %v3014_v29  ;;  %v861_v51 = vmax.f32 %v634_v21, 0.0 }
 0x1bc   :  { %v862_v49 = vmax.f32 %v636_v30, 0.0  ;;  %v926_v50 = vmax.f32 %v796_v39, 0.0  ;;  %v3234_v29 = vrot.slane %v1024_v28, %v3003_v24 }
 0x1bd   :  { %v863_v52 = vmax.f32 %v638_v43, 0.0  ;;  %v927_v54 = vmax.f32 %v798_v47, 0.0 }
 0x1be   :  { %v958_v55 = vpack.c.bf16 %v862_v49, %v860_v48  ;;  %v3204_v58 = vpack.c.bf16 %v926_v50, %v924_v37 }
 0x1bf   :  { %v959_v61 = vpack.c.bf16 %v863_v52, %v861_v51  ;;  %v3206_v2 = vpack.c.bf16 %v927_v54, %v925_v45 }
 0x1c1   :  { %1378 = vmatprep.mubr.bf16.mxu1 %v959_v61 }
 0x1c2   :  { %1379 = vmatmul.mubr.bf16.gmra.mrb[124].mxu1 %v958_v55 }
 0x1c3   :  { %1388 = vmatprep.mubr.bf16.mxu1 %v3026_v62 }
 0x1ca   :  { %1389 = vmatmul.mubr.bf16.gmra.mrb[128].mxu1 %v3024_v59  ;;  %v3238_v59 = vrot.slane %v1024_v28, %v3008_v25 }
 0x1cb   :  { %1398 = vmatprep.mubr.bf16.mxu1 %v3038_v32 }
 0x1d2   :  { %1399 = vmatmul.mubr.bf16.gmra.mrb[132].mxu1 %v3036_v27 }
 0x1d3   :  { %1408 = vmatprep.mubr.bf16.mxu1 %v3050_v1 }
 0x1da   :  { %1409 = vmatmul.mubr.bf16.gmra.mrb[136].mxu1 %v3048_v60 }
 0x1db   :  { %1418 = vmatprep.mubr.bf16.mxu1 %v3062_v36 }
 0x1e2   :  { %1419 = vmatmul.mubr.bf16.gmra.mrb[140].mxu1 %v3060_v33 }
 0x1e3   :  { %1428 = vmatprep.mubr.bf16.mxu1 %v3074_v7 }
 0x1ea   :  { %1429 = vmatmul.mubr.bf16.gmra.mrb[144].mxu1 %v3072_v4 }
 0x1eb   :  { %1438 = vmatprep.mubr.bf16.mxu1 %v3086_v44 }
 0x1f2   :  { %1439 = vmatmul.mubr.bf16.gmra.mrb[148].mxu1 %v3084_v41 }
 0x1f3   :  { %1448 = vmatprep.mubr.bf16.mxu1 %v3098_v17 }
 0x1fa   :  { %1449 = vmatmul.mubr.bf16.gmra.mrb[152].mxu1 %v3096_v14 }
 0x1fb   :  { %1458 = vmatprep.mubr.bf16.mxu1 %v3110_v56 }
 0x202   :  { %1459 = vmatmul.mubr.bf16.gmra.mrb[156].mxu1 %v3108_v53 }
 0x203   :  { %1468 = vmatprep.mubr.bf16.mxu1 %v3122_v38 }
 0x20a   :  { %1469 = vmatmul.mubr.bf16.gmra.mrb[160].mxu1 %v3120_v34 }
 0x20b   :  { %1478 = vmatprep.mubr.bf16.mxu1 %v3134_v16 }
 0x212   :  { %1479 = vmatmul.mubr.bf16.gmra.mrb[164].mxu1 %v3132_v12 }
 0x213   :  { %1488 = vmatprep.mubr.bf16.mxu1 %v3146_v63 }
 0x21a   :  { %1489 = vmatmul.mubr.bf16.gmra.mrb[168].mxu1 %v3144_v57 }
 0x21b   :  { %1498 = vmatprep.mubr.bf16.mxu1 %v3158_v46 }
 0x21d   :  { %v1230_v62 = vpop.f32.mrb[64].mxu1 }
 0x21e   :  { %v1231_v27 = vadd.f32 %v1230_v62, %v3234_v29  ;;  %v1232_v32 = vpop.f32.mrb[65].mxu1 }
 0x21f   :  { %v1233_v60 = vadd.f32 %v1232_v32, %v3238_v59  ;;  %v1234_v1 = vpop.f32.mrb[66].mxu1 }
 0x220   :  { %v1235_v33 = vadd.f32 %v1234_v1, %v3234_v29  ;;  %v1236_v36 = vpop.f32.mrb[67].mxu1  ;;  %v1549_v7 = vmax.f32 %v1231_v27, 0.0 }
 0x221   :  { %v1237_v4 = vadd.f32 %v1236_v36, %v3238_v59  ;;  %v1550_v44 = vmax.f32 %v1233_v60, 0.0 }
 0x222   :  { %v1551_v41 = vmax.f32 %v1235_v33, 0.0  ;;  %1499 = vmatmul.mubr.bf16.gmra.mrb[172].mxu1 %v3156_v42 }
 0x223   :  { %v1552_v14 = vmax.f32 %v1237_v4, 0.0  ;;  %1508 = vmatprep.mubr.bf16.mxu1 %v3170_v31 }
 0x224   :  { %v1677_v17 = vpack.c.bf16 %v1551_v41, %v1549_v7 }
 0x225   :  { %v1678_v53 = vpack.c.bf16 %v1552_v14, %v1550_v44  ;;  %v1240_v56 = vpop.f32.mrb[68].mxu1 }
 0x226   :  { %v1241_v34 = vadd.f32 %v1240_v56, %v3234_v29  ;;  %v1242_v38 = vpop.f32.mrb[69].mxu1 }
 0x227   :  { %v1243_v12 = vadd.f32 %v1242_v38, %v3238_v59  ;;  %v1244_v16 = vpop.f32.mrb[70].mxu1  ;;  %1977 = vmatprep.mubr.bf16.mxu0 %v1678_v53 }
 0x228   :  { %v1245_v57 = vadd.f32 %v1244_v16, %v3234_v29  ;;  %v1246_v63 = vpop.f32.mrb[71].mxu1  ;;  %1978 = vmatmul.mubr.bf16.vlgmr.msra.gmra.mrb[64].mxu0 %v1677_v17  ;;  %v1553_v46 = vmax.f32 %v1241_v34, 0.0 }
 0x229   :  { %v1247_v42 = vadd.f32 %v1246_v63, %v3238_v59  ;;  %v1554_v31 = vmax.f32 %v1243_v12, 0.0 }
 0x22a   :  { %v1555_v3 = vmax.f32 %v1245_v57, 0.0  ;;  %1509 = vmatmul.mubr.bf16.gmra.mrb[176].mxu1 %v3168_v0 }
 0x22b   :  { %v1556_v6 = vmax.f32 %v1247_v42, 0.0  ;;  %1518 = vmatprep.mubr.bf16.mxu1 %v3182_v19 }
 0x22c   :  { %v1679_v8 = vpack.c.bf16 %v1555_v3, %v1553_v46 }
 0x22d   :  { %v1680_v10 = vpack.c.bf16 %v1556_v6, %v1554_v31  ;;  %v1250_v11 = vpop.f32.mrb[72].mxu1 }
 0x22e   :  { %v1251_v15 = vadd.f32 %v1250_v11, %v3234_v29  ;;  %v1252_v18 = vpop.f32.mrb[73].mxu1 }
 0x22f   :  { %v1253_v20 = vadd.f32 %v1252_v18, %v3238_v59  ;;  %v1254_v21 = vpop.f32.mrb[74].mxu1  ;;  %1987 = vmatprep.mubr.bf16.mxu0 %v1680_v10 }
 0x230   :  { %v1255_v22 = vadd.f32 %v1254_v21, %v3234_v29  ;;  %v1256_v23 = vpop.f32.mrb[75].mxu1  ;;  %1988 = vmatmul.mubr.bf16.gmra.mrb[68].mxu0 %v1679_v8  ;;  %v1557_v26 = vmax.f32 %v1251_v15, 0.0 }
 0x231   :  { %v1257_v0 = vadd.f32 %v1256_v23, %v3238_v59  ;;  %v1558_v19 = vmax.f32 %v1253_v20, 0.0 }
 0x232   :  { %v1559_v30 = vmax.f32 %v1255_v22, 0.0  ;;  %1519 = vmatmul.mubr.bf16.gmra.mrb[180].mxu1 %v3180_v13 }
 0x233   :  { %v1560_v35 = vmax.f32 %v1257_v0, 0.0  ;;  %1528 = vmatprep.mubr.bf16.mxu1 %v3194_v9 }
 0x234   :  { %v1681_v37 = vpack.c.bf16 %v1559_v30, %v1557_v26 }
 0x235   :  { %v1682_v39 = vpack.c.bf16 %v1560_v35, %v1558_v19  ;;  %v1260_v40 = vpop.f32.mrb[76].mxu1 }
 0x236   :  { %v1261_v43 = vadd.f32 %v1260_v40, %v3234_v29  ;;  %v1262_v45 = vpop.f32.mrb[77].mxu1 }
 0x237   :  { %v1263_v47 = vadd.f32 %v1262_v45, %v3238_v59  ;;  %v1264_v48 = vpop.f32.mrb[78].mxu1  ;;  %1997 = vmatprep.mubr.bf16.mxu0 %v1682_v39 }
 0x238   :  { %v1265_v49 = vadd.f32 %v1264_v48, %v3234_v29  ;;  %v1266_v50 = vpop.f32.mrb[79].mxu1  ;;  %1998 = vmatmul.mubr.bf16.gmra.mrb[72].mxu0 %v1681_v37  ;;  %v1561_v51 = vmax.f32 %v1261_v43, 0.0 }
 0x239   :  { %v1267_v13 = vadd.f32 %v1266_v50, %v3238_v59  ;;  %v1562_v9 = vmax.f32 %v1263_v47, 0.0 }
 0x23a   :  { %v1563_v52 = vmax.f32 %v1265_v49, 0.0  ;;  %1529 = vmatmul.mubr.bf16.gmra.mrb[184].mxu1 %v3192_v5 }
 0x23b   :  { %v1564_v54 = vmax.f32 %v1267_v13, 0.0  ;;  %1538 = vmatprep.mubr.bf16.mxu1 %v3206_v2 }
 0x23c   :  { %v1683_v55 = vpack.c.bf16 %v1563_v52, %v1561_v51 }
 0x23d   :  { %v1684_v61 = vpack.c.bf16 %v1564_v54, %v1562_v9  ;;  %v1270_v28 = vpop.f32.mrb[80].mxu1 }
 0x23e   :  { %v1271_v62 = vadd.f32 %v1270_v28, %v3234_v29  ;;  %v1272_v27 = vpop.f32.mrb[81].mxu1 }
 0x23f   :  { %v1273_v32 = vadd.f32 %v1272_v27, %v3238_v59  ;;  %v1274_v60 = vpop.f32.mrb[82].mxu1  ;;  %2007 = vmatprep.mubr.bf16.mxu0 %v1684_v61 }
 0x240   :  { %v1275_v1 = vadd.f32 %v1274_v60, %v3234_v29  ;;  %v1276_v33 = vpop.f32.mrb[83].mxu1  ;;  %2008 = vmatmul.mubr.bf16.gmra.mrb[76].mxu0 %v1683_v55  ;;  %v1565_v36 = vmax.f32 %v1271_v62, 0.0 }
 0x241   :  { %v1277_v5 = vadd.f32 %v1276_v33, %v3238_v59  ;;  %v1566_v2 = vmax.f32 %v1273_v32, 0.0 }
 0x242   :  { %v1567_v4 = vmax.f32 %v1275_v1, 0.0  ;;  %1539 = vmatmul.mubr.bf16.gmra.mrb[188].mxu1 %v3204_v58 }
 0x243   :  { %v1568_v7 = vmax.f32 %v1277_v5, 0.0 }
 0x244   :  { %v1685_v41 = vpack.c.bf16 %v1567_v4, %v1565_v36 }
 0x245   :  { %v1686_v44 = vpack.c.bf16 %v1568_v7, %v1566_v2  ;;  %v1280_v14 = vpop.f32.mrb[84].mxu1 }
 0x246   :  { %v1281_v17 = vadd.f32 %v1280_v14, %v3234_v29  ;;  %v1282_v53 = vpop.f32.mrb[85].mxu1 }
 0x247   :  { %v1283_v56 = vadd.f32 %v1282_v53, %v3238_v59  ;;  %v1284_v34 = vpop.f32.mrb[86].mxu1  ;;  %2017 = vmatprep.mubr.bf16.mxu0 %v1686_v44 }
 0x248   :  { %v1285_v38 = vadd.f32 %v1284_v34, %v3234_v29  ;;  %v1286_v12 = vpop.f32.mrb[87].mxu1  ;;  %2018 = vmatmul.mubr.bf16.gmra.mrb[80].mxu0 %v1685_v41  ;;  %v1569_v57 = vmax.f32 %v1281_v17, 0.0 }
 0x249   :  { %v1287_v16 = vadd.f32 %v1286_v12, %v3238_v59  ;;  %v1570_v63 = vmax.f32 %v1283_v56, 0.0 }
 0x24a   :  { %v1571_v58 = vmax.f32 %v1285_v38, 0.0 }
 0x24b   :  { %v1572_v42 = vmax.f32 %v1287_v16, 0.0 }
 0x24c   :  { %v1687_v46 = vpack.c.bf16 %v1571_v58, %v1569_v57 }
 0x24d   :  { %v1688_v3 = vpack.c.bf16 %v1572_v42, %v1570_v63  ;;  %v1290_v31 = vpop.f32.mrb[88].mxu1 }
 0x24e   :  { %v1291_v6 = vadd.f32 %v1290_v31, %v3234_v29  ;;  %v1292_v8 = vpop.f32.mrb[89].mxu1 }
 0x24f   :  { %v1293_v10 = vadd.f32 %v1292_v8, %v3238_v59  ;;  %v1294_v11 = vpop.f32.mrb[90].mxu1  ;;  %2027 = vmatprep.mubr.bf16.mxu0 %v1688_v3 }
 0x250   :  { %v1295_v15 = vadd.f32 %v1294_v11, %v3234_v29  ;;  %v1296_v18 = vpop.f32.mrb[91].mxu1  ;;  %2028 = vmatmul.mubr.bf16.gmra.mrb[84].mxu0 %v1687_v46  ;;  %v1573_v21 = vmax.f32 %v1291_v6, 0.0 }
 0x251   :  { %v1297_v20 = vadd.f32 %v1296_v18, %v3238_v59  ;;  %v1574_v23 = vmax.f32 %v1293_v10, 0.0 }
 0x252   :  { %v1575_v22 = vmax.f32 %v1295_v15, 0.0 }
 0x253   :  { %v1576_v0 = vmax.f32 %v1297_v20, 0.0 }
 0x254   :  { %v1689_v26 = vpack.c.bf16 %v1575_v22, %v1573_v21 }
 0x255   :  { %v1690_v30 = vpack.c.bf16 %v1576_v0, %v1574_v23  ;;  %v1300_v19 = vpop.f32.mrb[92].mxu1 }
 0x256   :  { %v1301_v35 = vadd.f32 %v1300_v19, %v3234_v29  ;;  %v1302_v37 = vpop.f32.mrb[93].mxu1 }
 0x257   :  { %v1303_v39 = vadd.f32 %v1302_v37, %v3238_v59  ;;  %v1304_v40 = vpop.f32.mrb[94].mxu1  ;;  %2037 = vmatprep.mubr.bf16.mxu0 %v1690_v30 }
 0x258   :  { %v1305_v43 = vadd.f32 %v1304_v40, %v3234_v29  ;;  %v1306_v45 = vpop.f32.mrb[95].mxu1  ;;  %2038 = vmatmul.mubr.bf16.gmra.mrb[88].mxu0 %v1689_v26  ;;  %v1577_v48 = vmax.f32 %v1301_v35, 0.0 }
 0x259   :  { %v1307_v47 = vadd.f32 %v1306_v45, %v3238_v59  ;;  %v1578_v50 = vmax.f32 %v1303_v39, 0.0 }
 0x25a   :  { %v1579_v49 = vmax.f32 %v1305_v43, 0.0 }
 0x25b   :  { %v1580_v13 = vmax.f32 %v1307_v47, 0.0 }
 0x25c   :  { %v1691_v51 = vpack.c.bf16 %v1579_v49, %v1577_v48 }
 0x25d   :  { %v1692_v52 = vpack.c.bf16 %v1580_v13, %v1578_v50  ;;  %v1310_v9 = vpop.f32.mrb[96].mxu1 }
 0x25e   :  { %v1311_v54 = vadd.f32 %v1310_v9, %v3234_v29  ;;  %v1312_v55 = vpop.f32.mrb[97].mxu1 }
 0x25f   :  { %v1313_v61 = vadd.f32 %v1312_v55, %v3238_v59  ;;  %v1314_v28 = vpop.f32.mrb[98].mxu1  ;;  %2047 = vmatprep.mubr.bf16.mxu0 %v1692_v52 }
 0x260   :  { %v1315_v62 = vadd.f32 %v1314_v28, %v3234_v29  ;;  %v1316_v27 = vpop.f32.mrb[99].mxu1  ;;  %2048 = vmatmul.mubr.bf16.gmra.mrb[92].mxu0 %v1691_v51  ;;  %v1581_v60 = vmax.f32 %v1311_v54, 0.0 }
 0x261   :  { %v1317_v32 = vadd.f32 %v1316_v27, %v3238_v59  ;;  %v1582_v33 = vmax.f32 %v1313_v61, 0.0 }
 0x262   :  { %v1583_v1 = vmax.f32 %v1315_v62, 0.0 }
 0x263   :  { %v1584_v5 = vmax.f32 %v1317_v32, 0.0 }
 0x264   :  { %v1693_v36 = vpack.c.bf16 %v1583_v1, %v1581_v60 }
 0x265   :  { %v1694_v4 = vpack.c.bf16 %v1584_v5, %v1582_v33  ;;  %v1320_v2 = vpop.f32.mrb[100].mxu1 }
 0x266   :  { %v1321_v7 = vadd.f32 %v1320_v2, %v3234_v29  ;;  %v1322_v41 = vpop.f32.mrb[101].mxu1 }
 0x267   :  { %v1323_v44 = vadd.f32 %v1322_v41, %v3238_v59  ;;  %v1324_v14 = vpop.f32.mrb[102].mxu1  ;;  %2057 = vmatprep.mubr.bf16.mxu0 %v1694_v4 }
 0x268   :  { %v1325_v17 = vadd.f32 %v1324_v14, %v3234_v29  ;;  %v1326_v53 = vpop.f32.mrb[103].mxu1  ;;  %2058 = vmatmul.mubr.bf16.gmra.mrb[96].mxu0 %v1693_v36  ;;  %v1585_v34 = vmax.f32 %v1321_v7, 0.0 }
 0x269   :  { %v1327_v56 = vadd.f32 %v1326_v53, %v3238_v59  ;;  %v1586_v12 = vmax.f32 %v1323_v44, 0.0 }
 0x26a   :  { %v1587_v38 = vmax.f32 %v1325_v17, 0.0 }
 0x26b   :  { %v1588_v16 = vmax.f32 %v1327_v56, 0.0 }
 0x26c   :  { %v1695_v57 = vpack.c.bf16 %v1587_v38, %v1585_v34 }
 0x26d   :  { %v1696_v58 = vpack.c.bf16 %v1588_v16, %v1586_v12  ;;  %v1330_v63 = vpop.f32.mrb[104].mxu1 }
 0x26e   :  { %v1331_v42 = vadd.f32 %v1330_v63, %v3234_v29  ;;  %v1332_v46 = vpop.f32.mrb[105].mxu1 }
 0x26f   :  { %v1333_v3 = vadd.f32 %v1332_v46, %v3238_v59  ;;  %v1334_v31 = vpop.f32.mrb[106].mxu1  ;;  %2067 = vmatprep.mubr.bf16.mxu0 %v1696_v58 }
 0x270   :  { %v1335_v6 = vadd.f32 %v1334_v31, %v3234_v29  ;;  %v1336_v8 = vpop.f32.mrb[107].mxu1  ;;  %2068 = vmatmul.mubr.bf16.gmra.mrb[100].mxu0 %v1695_v57  ;;  %v1589_v11 = vmax.f32 %v1331_v42, 0.0 }
 0x271   :  { %v1337_v10 = vadd.f32 %v1336_v8, %v3238_v59  ;;  %v1590_v18 = vmax.f32 %v1333_v3, 0.0 }
 0x272   :  { %v1591_v15 = vmax.f32 %v1335_v6, 0.0 }
 0x273   :  { %v1592_v20 = vmax.f32 %v1337_v10, 0.0 }
 0x274   :  { %v1697_v21 = vpack.c.bf16 %v1591_v15, %v1589_v11 }
 0x275   :  { %v1698_v22 = vpack.c.bf16 %v1592_v20, %v1590_v18  ;;  %v1340_v23 = vpop.f32.mrb[108].mxu1 }
 0x276   :  { %v1341_v0 = vadd.f32 %v1340_v23, %v3234_v29  ;;  %v1342_v26 = vpop.f32.mrb[109].mxu1 }
 0x277   :  { %v1343_v30 = vadd.f32 %v1342_v26, %v3238_v59  ;;  %v1344_v19 = vpop.f32.mrb[110].mxu1  ;;  %2077 = vmatprep.mubr.bf16.mxu0 %v1698_v22 }
 0x278   :  { %v1345_v35 = vadd.f32 %v1344_v19, %v3234_v29  ;;  %v1346_v37 = vpop.f32.mrb[111].mxu1  ;;  %2078 = vmatmul.mubr.bf16.gmra.mrb[104].mxu0 %v1697_v21  ;;  %v1593_v40 = vmax.f32 %v1341_v0, 0.0 }
 0x279   :  { %v1347_v39 = vadd.f32 %v1346_v37, %v3238_v59  ;;  %v1594_v45 = vmax.f32 %v1343_v30, 0.0 }
 0x27a   :  { %v1595_v43 = vmax.f32 %v1345_v35, 0.0 }
 0x27b   :  { %v1596_v47 = vmax.f32 %v1347_v39, 0.0 }
 0x27c   :  { %v1699_v48 = vpack.c.bf16 %v1595_v43, %v1593_v40 }
 0x27d   :  { %v1700_v49 = vpack.c.bf16 %v1596_v47, %v1594_v45  ;;  %v1350_v50 = vpop.f32.mrb[112].mxu1 }
 0x27e   :  { %v1351_v13 = vadd.f32 %v1350_v50, %v3234_v29  ;;  %v1352_v51 = vpop.f32.mrb[113].mxu1 }
 0x27f   :  { %v1353_v52 = vadd.f32 %v1352_v51, %v3238_v59  ;;  %v1354_v9 = vpop.f32.mrb[114].mxu1  ;;  %2087 = vmatprep.mubr.bf16.mxu0 %v1700_v49 }
 0x280   :  { %v1355_v54 = vadd.f32 %v1354_v9, %v3234_v29  ;;  %v1356_v55 = vpop.f32.mrb[115].mxu1  ;;  %2088 = vmatmul.mubr.bf16.gmra.mrb[108].mxu0 %v1699_v48  ;;  %v1597_v28 = vmax.f32 %v1351_v13, 0.0 }
 0x281   :  { %v1357_v61 = vadd.f32 %v1356_v55, %v3238_v59  ;;  %v1598_v27 = vmax.f32 %v1353_v52, 0.0 }
 0x282   :  { %v1599_v62 = vmax.f32 %v1355_v54, 0.0 }
 0x283   :  { %v1600_v32 = vmax.f32 %v1357_v61, 0.0 }
 0x284   :  { %v1701_v60 = vpack.c.bf16 %v1599_v62, %v1597_v28 }
 0x285   :  { %v1702_v1 = vpack.c.bf16 %v1600_v32, %v1598_v27  ;;  %v1360_v33 = vpop.f32.mrb[116].mxu1 }
 0x286   :  { %v1361_v5 = vadd.f32 %v1360_v33, %v3234_v29  ;;  %v1362_v36 = vpop.f32.mrb[117].mxu1 }
 0x287   :  { %v1363_v4 = vadd.f32 %v1362_v36, %v3238_v59  ;;  %v1364_v2 = vpop.f32.mrb[118].mxu1  ;;  %2097 = vmatprep.mubr.bf16.mxu0 %v1702_v1 }
 0x288   :  { %v1365_v7 = vadd.f32 %v1364_v2, %v3234_v29  ;;  %v1366_v41 = vpop.f32.mrb[119].mxu1  ;;  %2098 = vmatmul.mubr.bf16.gmra.mrb[112].mxu0 %v1701_v60  ;;  %v1601_v14 = vmax.f32 %v1361_v5, 0.0 }
 0x289   :  { %v1367_v44 = vadd.f32 %v1366_v41, %v3238_v59  ;;  %v1602_v53 = vmax.f32 %v1363_v4, 0.0 }
 0x28a   :  { %v1603_v17 = vmax.f32 %v1365_v7, 0.0 }
 0x28b   :  { %v1604_v56 = vmax.f32 %v1367_v44, 0.0 }
 0x28c   :  { %v1703_v34 = vpack.c.bf16 %v1603_v17, %v1601_v14 }
 0x28d   :  { %v1704_v38 = vpack.c.bf16 %v1604_v56, %v1602_v53  ;;  %v1370_v12 = vpop.f32.mrb[120].mxu1 }
 0x28e   :  { %v1371_v16 = vadd.f32 %v1370_v12, %v3234_v29  ;;  %v1372_v57 = vpop.f32.mrb[121].mxu1 }
 0x28f   :  { %v1373_v58 = vadd.f32 %v1372_v57, %v3238_v59  ;;  %v1374_v63 = vpop.f32.mrb[122].mxu1  ;;  %2107 = vmatprep.mubr.bf16.mxu0 %v1704_v38 }
 0x290   :  { %v1375_v42 = vadd.f32 %v1374_v63, %v3234_v29  ;;  %v1376_v46 = vpop.f32.mrb[123].mxu1  ;;  %2108 = vmatmul.mubr.bf16.gmra.mrb[116].mxu0 %v1703_v34  ;;  %v1605_v31 = vmax.f32 %v1371_v16, 0.0 }
 0x291   :  { %v1377_v3 = vadd.f32 %v1376_v46, %v3238_v59  ;;  %v1606_v8 = vmax.f32 %v1373_v58, 0.0 }
 0x292   :  { %v1607_v6 = vmax.f32 %v1375_v42, 0.0 }
 0x293   :  { %v1608_v10 = vmax.f32 %v1377_v3, 0.0 }
 0x294   :  { %v1705_v11 = vpack.c.bf16 %v1607_v6, %v1605_v31 }
 0x295   :  { %v1706_v15 = vpack.c.bf16 %v1608_v10, %v1606_v8  ;;  %v1380_v18 = vpop.f32.mrb[124].mxu1 }
 0x296   :  { %v1381_v20 = vadd.f32 %v1380_v18, %v3234_v29  ;;  %v1382_v21 = vpop.f32.mrb[125].mxu1 }
 0x297   :  { %v1383_v22 = vadd.f32 %v1382_v21, %v3238_v59  ;;  %v1384_v23 = vpop.f32.mrb[126].mxu1  ;;  %2117 = vmatprep.mubr.bf16.mxu0 %v1706_v15 }
 0x298   :  { %v1385_v0 = vadd.f32 %v1384_v23, %v3234_v29  ;;  %v1386_v26 = vpop.f32.mrb[127].mxu1  ;;  %2118 = vmatmul.mubr.bf16.gmra.mrb[120].mxu0 %v1705_v11  ;;  %v1609_v19 = vmax.f32 %v1381_v20, 0.0 }
 0x299   :  { %v1387_v30 = vadd.f32 %v1386_v26, %v3238_v59  ;;  %v1610_v37 = vmax.f32 %v1383_v22, 0.0 }
 0x29a   :  { %v1611_v35 = vmax.f32 %v1385_v0, 0.0 }
 0x29b   :  { %v1612_v39 = vmax.f32 %v1387_v30, 0.0 }
 0x29c   :  { %v1707_v40 = vpack.c.bf16 %v1611_v35, %v1609_v19 }
 0x29d   :  { %v1708_v43 = vpack.c.bf16 %v1612_v39, %v1610_v37  ;;  %v1390_v45 = vpop.f32.mrb[128].mxu1 }
 0x29e   :  { %v1391_v47 = vadd.f32 %v1390_v45, %v3234_v29  ;;  %v1392_v48 = vpop.f32.mrb[129].mxu1 }
 0x29f   :  { %v1393_v49 = vadd.f32 %v1392_v48, %v3238_v59  ;;  %v1394_v50 = vpop.f32.mrb[130].mxu1  ;;  %2127 = vmatprep.mubr.bf16.mxu0 %v1708_v43 }
 0x2a0   :  { %v1395_v13 = vadd.f32 %v1394_v50, %v3234_v29  ;;  %v1396_v51 = vpop.f32.mrb[131].mxu1  ;;  %2128 = vmatmul.mubr.bf16.gmra.mrb[124].mxu0 %v1707_v40  ;;  %v1613_v9 = vmax.f32 %v1391_v47, 0.0 }
 0x2a1   :  { %v1397_v52 = vadd.f32 %v1396_v51, %v3238_v59  ;;  %v1614_v55 = vmax.f32 %v1393_v49, 0.0 }
 0x2a2   :  { %v1615_v54 = vmax.f32 %v1395_v13, 0.0 }
 0x2a3   :  { %v1616_v61 = vmax.f32 %v1397_v52, 0.0 }
 0x2a4   :  { %v1709_v28 = vpack.c.bf16 %v1615_v54, %v1613_v9 }
 0x2a5   :  { %v1710_v62 = vpack.c.bf16 %v1616_v61, %v1614_v55  ;;  %v1400_v27 = vpop.f32.mrb[132].mxu1 }
 0x2a6   :  { %v1401_v32 = vadd.f32 %v1400_v27, %v3234_v29  ;;  %v1402_v60 = vpop.f32.mrb[133].mxu1 }
 0x2a7   :  { %v1403_v1 = vadd.f32 %v1402_v60, %v3238_v59  ;;  %v1404_v33 = vpop.f32.mrb[134].mxu1  ;;  %2137 = vmatprep.mubr.bf16.mxu0 %v1710_v62 }
 0x2a8   :  { %v1405_v5 = vadd.f32 %v1404_v33, %v3234_v29  ;;  %v1406_v36 = vpop.f32.mrb[135].mxu1  ;;  %2138 = vmatmul.mubr.bf16.gmra.mrb[128].mxu0 %v1709_v28  ;;  %v1617_v2 = vmax.f32 %v1401_v32, 0.0 }
 0x2a9   :  { %v1407_v4 = vadd.f32 %v1406_v36, %v3238_v59  ;;  %v1618_v41 = vmax.f32 %v1403_v1, 0.0 }
 0x2aa   :  { %v1619_v7 = vmax.f32 %v1405_v5, 0.0 }
 0x2ab   :  { %v1620_v44 = vmax.f32 %v1407_v4, 0.0 }
 0x2ac   :  { %v1711_v14 = vpack.c.bf16 %v1619_v7, %v1617_v2 }
 0x2ad   :  { %v1712_v17 = vpack.c.bf16 %v1620_v44, %v1618_v41  ;;  %v1410_v53 = vpop.f32.mrb[136].mxu1 }
 0x2ae   :  { %v1411_v56 = vadd.f32 %v1410_v53, %v3234_v29  ;;  %v1412_v34 = vpop.f32.mrb[137].mxu1 }
 0x2af   :  { %v1413_v38 = vadd.f32 %v1412_v34, %v3238_v59  ;;  %v1414_v12 = vpop.f32.mrb[138].mxu1  ;;  %2147 = vmatprep.mubr.bf16.mxu0 %v1712_v17 }
 0x2b0   :  { %v1415_v16 = vadd.f32 %v1414_v12, %v3234_v29  ;;  %v1416_v57 = vpop.f32.mrb[139].mxu1  ;;  %2148 = vmatmul.mubr.bf16.gmra.mrb[132].mxu0 %v1711_v14  ;;  %v1621_v63 = vmax.f32 %v1411_v56, 0.0 }
 0x2b1   :  { %v1417_v58 = vadd.f32 %v1416_v57, %v3238_v59  ;;  %v1622_v46 = vmax.f32 %v1413_v38, 0.0 }
 0x2b2   :  { %v1623_v42 = vmax.f32 %v1415_v16, 0.0 }
 0x2b3   :  { %v1624_v3 = vmax.f32 %v1417_v58, 0.0 }
 0x2b4   :  { %v1713_v31 = vpack.c.bf16 %v1623_v42, %v1621_v63 }
 0x2b5   :  { %v1714_v6 = vpack.c.bf16 %v1624_v3, %v1622_v46  ;;  %v1420_v8 = vpop.f32.mrb[140].mxu1 }
 0x2b6   :  { %v1421_v10 = vadd.f32 %v1420_v8, %v3234_v29  ;;  %v1422_v11 = vpop.f32.mrb[141].mxu1 }
 0x2b7   :  { %v1423_v15 = vadd.f32 %v1422_v11, %v3238_v59  ;;  %v1424_v18 = vpop.f32.mrb[142].mxu1  ;;  %2157 = vmatprep.mubr.bf16.mxu0 %v1714_v6 }
 0x2b8   :  { %v1425_v20 = vadd.f32 %v1424_v18, %v3234_v29  ;;  %v1426_v21 = vpop.f32.mrb[143].mxu1  ;;  %2158 = vmatmul.mubr.bf16.gmra.mrb[136].mxu0 %v1713_v31  ;;  %v1625_v23 = vmax.f32 %v1421_v10, 0.0 }
 0x2b9   :  { %v1427_v22 = vadd.f32 %v1426_v21, %v3238_v59  ;;  %v1626_v26 = vmax.f32 %v1423_v15, 0.0 }
 0x2ba   :  { %v1627_v0 = vmax.f32 %v1425_v20, 0.0 }
 0x2bb   :  { %v1628_v30 = vmax.f32 %v1427_v22, 0.0 }
 0x2bc   :  { %v1715_v19 = vpack.c.bf16 %v1627_v0, %v1625_v23 }
 0x2bd   :  { %v1716_v35 = vpack.c.bf16 %v1628_v30, %v1626_v26  ;;  %v1430_v37 = vpop.f32.mrb[144].mxu1 }
 0x2be   :  { %v1431_v39 = vadd.f32 %v1430_v37, %v3234_v29  ;;  %v1432_v40 = vpop.f32.mrb[145].mxu1 }
 0x2bf   :  { %v1433_v43 = vadd.f32 %v1432_v40, %v3238_v59  ;;  %v1434_v45 = vpop.f32.mrb[146].mxu1  ;;  %2167 = vmatprep.mubr.bf16.mxu0 %v1716_v35 }
 0x2c0   :  { %v1435_v47 = vadd.f32 %v1434_v45, %v3234_v29  ;;  %v1436_v48 = vpop.f32.mrb[147].mxu1  ;;  %2168 = vmatmul.mubr.bf16.gmra.mrb[140].mxu0 %v1715_v19  ;;  %v1629_v50 = vmax.f32 %v1431_v39, 0.0 }
 0x2c1   :  { %v1437_v49 = vadd.f32 %v1436_v48, %v3238_v59  ;;  %v1630_v51 = vmax.f32 %v1433_v43, 0.0 }
 0x2c2   :  { %v1631_v13 = vmax.f32 %v1435_v47, 0.0 }
 0x2c3   :  { %v1632_v52 = vmax.f32 %v1437_v49, 0.0 }
 0x2c4   :  { %v1717_v9 = vpack.c.bf16 %v1631_v13, %v1629_v50 }
 0x2c5   :  { %v1718_v54 = vpack.c.bf16 %v1632_v52, %v1630_v51  ;;  %v1440_v55 = vpop.f32.mrb[148].mxu1 }
 0x2c6   :  { %v1441_v61 = vadd.f32 %v1440_v55, %v3234_v29  ;;  %v1442_v28 = vpop.f32.mrb[149].mxu1 }
 0x2c7   :  { %v1443_v62 = vadd.f32 %v1442_v28, %v3238_v59  ;;  %v1444_v27 = vpop.f32.mrb[150].mxu1  ;;  %2177 = vmatprep.mubr.bf16.mxu0 %v1718_v54 }
 0x2c8   :  { %v1445_v32 = vadd.f32 %v1444_v27, %v3234_v29  ;;  %v1446_v60 = vpop.f32.mrb[151].mxu1  ;;  %2178 = vmatmul.mubr.bf16.gmra.mrb[144].mxu0 %v1717_v9  ;;  %v1633_v33 = vmax.f32 %v1441_v61, 0.0 }
 0x2c9   :  { %v1447_v1 = vadd.f32 %v1446_v60, %v3238_v59  ;;  %v1634_v36 = vmax.f32 %v1443_v62, 0.0 }
 0x2ca   :  { %v1635_v5 = vmax.f32 %v1445_v32, 0.0 }
 0x2cb   :  { %v1636_v4 = vmax.f32 %v1447_v1, 0.0 }
 0x2cc   :  { %v1719_v2 = vpack.c.bf16 %v1635_v5, %v1633_v33 }
 0x2cd   :  { %v1720_v7 = vpack.c.bf16 %v1636_v4, %v1634_v36  ;;  %v1450_v41 = vpop.f32.mrb[152].mxu1 }
 0x2ce   :  { %v1451_v44 = vadd.f32 %v1450_v41, %v3234_v29  ;;  %v1452_v14 = vpop.f32.mrb[153].mxu1 }
 0x2cf   :  { %v1453_v17 = vadd.f32 %v1452_v14, %v3238_v59  ;;  %v1454_v53 = vpop.f32.mrb[154].mxu1  ;;  %2187 = vmatprep.mubr.bf16.mxu0 %v1720_v7 }
 0x2d0   :  { %v1455_v56 = vadd.f32 %v1454_v53, %v3234_v29  ;;  %v1456_v34 = vpop.f32.mrb[155].mxu1  ;;  %2188 = vmatmul.mubr.bf16.gmra.mrb[148].mxu0 %v1719_v2  ;;  %v1637_v12 = vmax.f32 %v1451_v44, 0.0 }
 0x2d1   :  { %v1457_v38 = vadd.f32 %v1456_v34, %v3238_v59  ;;  %v1638_v57 = vmax.f32 %v1453_v17, 0.0 }
 0x2d2   :  { %v1639_v16 = vmax.f32 %v1455_v56, 0.0 }
 0x2d3   :  { %v1640_v58 = vmax.f32 %v1457_v38, 0.0 }
 0x2d4   :  { %v1721_v63 = vpack.c.bf16 %v1639_v16, %v1637_v12 }
 0x2d5   :  { %v1722_v42 = vpack.c.bf16 %v1640_v58, %v1638_v57  ;;  %v1460_v46 = vpop.f32.mrb[156].mxu1  ;;  %v1773_v58 = vld [vmem:[%s3532_s6] sm:$0x3]  ;;  %s2864_s6 = smov [#allocation10]  }
 0x2d6   :  { %v1461_v3 = vadd.f32 %v1460_v46, %v3234_v29  ;;  %v1462_v31 = vpop.f32.mrb[157].mxu1  ;;  %s2431_s29 = sshll.u32 %s2864_s6, 4  ;;  %s2432_s29 = int_to_ptr.vmem [resolvable:$true] %s2431_s29 }
 0x2d7   :  { %v1463_v6 = vadd.f32 %v1462_v31, %v3238_v59  ;;  %v1464_v8 = vpop.f32.mrb[158].mxu1  ;;  %2197 = vmatprep.mubr.bf16.mxu0 %v1722_v42  ;;  %s2825_s30 = scalar_lea.vmem %s2432_s29, 16384  ;;  %p2830_p5 = scmp.lt.s32.totalorder %s2432_s29, %s2432_s29 }
 0x2d8   :  { %v1465_v10 = vadd.f32 %v1464_v8, %v3234_v29  ;;  %v1466_v11 = vpop.f32.mrb[159].mxu1  ;;  %2198 = vmatmul.mubr.bf16.gmra.mrb[152].mxu0 %v1721_v63  ;;  %v1641_v18 = vmax.f32 %v1461_v3, 0.0  ;;  %v3364_v8 = vrot.slane %v1773_v58, %v3003_v24  ;;  %p2826_p4 = scmp.ne.s32.totalorder %s2432_s29, %s2825_s30  ;;  %p2831_p6 = scmp.lt.s32.totalorder %s2825_s30, %s2825_s30 }
 0x2d9   :  { %v1467_v15 = vadd.f32 %v1466_v11, %v3238_v59  ;;  %v1642_v21 = vmax.f32 %v1463_v6, 0.0  ;;  %v3368_v11 = vrot.slane %v1773_v58, %v3008_v25 }
 0x2da   :  { %v1643_v20 = vmax.f32 %v1465_v10, 0.0  ;;  %p2832_p7 = por %p2831_p6, %p2830_p5 }
 0x2db   :  { %v1644_v22 = vmax.f32 %v1467_v15, 0.0 }
 0x2dc   :  { %v1723_v23 = vpack.c.bf16 %v1643_v20, %v1641_v18  ;;  %p2833_p8 = pnand %p2832_p7, %p2826_p4 }
 0x2dd   :  { %v1724_v0 = vpack.c.bf16 %v1644_v22, %v1642_v21  ;;  %v1470_v26 = vpop.f32.mrb[160].mxu1 }
 0x2de   :  { %v1471_v30 = vadd.f32 %v1470_v26, %v3234_v29  ;;  %v1472_v19 = vpop.f32.mrb[161].mxu1 }
 0x2df   :  { %v1473_v35 = vadd.f32 %v1472_v19, %v3238_v59  ;;  %v1474_v37 = vpop.f32.mrb[162].mxu1  ;;  %2207 = vmatprep.mubr.bf16.mxu0 %v1724_v0 }
 0x2e0   :  { %v1475_v39 = vadd.f32 %v1474_v37, %v3234_v29  ;;  %v1476_v40 = vpop.f32.mrb[163].mxu1  ;;  %2208 = vmatmul.mubr.bf16.gmra.mrb[156].mxu0 %v1723_v23  ;;  %v1645_v45 = vmax.f32 %v1471_v30, 0.0 }
 0x2e1   :  { %v1477_v43 = vadd.f32 %v1476_v40, %v3238_v59  ;;  %v1646_v48 = vmax.f32 %v1473_v35, 0.0 }
 0x2e2   :  { %v1647_v47 = vmax.f32 %v1475_v39, 0.0 }
 0x2e3   :  { %v1648_v49 = vmax.f32 %v1477_v43, 0.0 }
 0x2e4   :  { %v1725_v50 = vpack.c.bf16 %v1647_v47, %v1645_v45 }
 0x2e5   :  { %v1726_v13 = vpack.c.bf16 %v1648_v49, %v1646_v48  ;;  %v1480_v51 = vpop.f32.mrb[164].mxu1 }
 0x2e6   :  { %v1481_v52 = vadd.f32 %v1480_v51, %v3234_v29  ;;  %v1482_v9 = vpop.f32.mrb[165].mxu1 }
 0x2e7   :  { %v1483_v54 = vadd.f32 %v1482_v9, %v3238_v59  ;;  %v1484_v55 = vpop.f32.mrb[166].mxu1  ;;  %2217 = vmatprep.mubr.bf16.mxu0 %v1726_v13 }
 0x2e8   :  { %v1485_v61 = vadd.f32 %v1484_v55, %v3234_v29  ;;  %v1486_v28 = vpop.f32.mrb[167].mxu1  ;;  %2218 = vmatmul.mubr.bf16.gmra.mrb[160].mxu0 %v1725_v50  ;;  %v1649_v27 = vmax.f32 %v1481_v52, 0.0 }
 0x2e9   :  { %v1487_v62 = vadd.f32 %v1486_v28, %v3238_v59  ;;  %v1650_v60 = vmax.f32 %v1483_v54, 0.0 }
 0x2ea   :  { %v1651_v32 = vmax.f32 %v1485_v61, 0.0 }
 0x2eb   :  { %v1652_v1 = vmax.f32 %v1487_v62, 0.0 }
 0x2ec   :  { %v1727_v33 = vpack.c.bf16 %v1651_v32, %v1649_v27 }
 0x2ed   :  { %v1728_v5 = vpack.c.bf16 %v1652_v1, %v1650_v60  ;;  %v1490_v36 = vpop.f32.mrb[168].mxu1 }
 0x2ee   :  { %v1491_v4 = vadd.f32 %v1490_v36, %v3234_v29  ;;  %v1492_v2 = vpop.f32.mrb[169].mxu1 }
 0x2ef   :  { %v1493_v7 = vadd.f32 %v1492_v2, %v3238_v59  ;;  %v1494_v41 = vpop.f32.mrb[170].mxu1  ;;  %2227 = vmatprep.mubr.bf16.mxu0 %v1728_v5 }
 0x2f0   :  { %v1495_v44 = vadd.f32 %v1494_v41, %v3234_v29  ;;  %v1496_v14 = vpop.f32.mrb[171].mxu1  ;;  %2228 = vmatmul.mubr.bf16.gmra.mrb[164].mxu0 %v1727_v33  ;;  %v1653_v53 = vmax.f32 %v1491_v4, 0.0 }
 0x2f1   :  { %v1497_v17 = vadd.f32 %v1496_v14, %v3238_v59  ;;  %v1654_v34 = vmax.f32 %v1493_v7, 0.0 }
 0x2f2   :  { %v1655_v56 = vmax.f32 %v1495_v44, 0.0 }
 0x2f3   :  { %v1656_v38 = vmax.f32 %v1497_v17, 0.0 }
 0x2f4   :  { %v1729_v12 = vpack.c.bf16 %v1655_v56, %v1653_v53 }
 0x2f5   :  { %v1730_v16 = vpack.c.bf16 %v1656_v38, %v1654_v34  ;;  %v1500_v57 = vpop.f32.mrb[172].mxu1 }
 0x2f6   :  { %v1501_v63 = vadd.f32 %v1500_v57, %v3234_v29  ;;  %v1502_v42 = vpop.f32.mrb[173].mxu1 }
 0x2f7   :  { %v1503_v46 = vadd.f32 %v1502_v42, %v3238_v59  ;;  %v1504_v3 = vpop.f32.mrb[174].mxu1  ;;  %2237 = vmatprep.mubr.bf16.mxu0 %v1730_v16 }
 0x2f8   :  { %v1505_v31 = vadd.f32 %v1504_v3, %v3234_v29  ;;  %v1506_v6 = vpop.f32.mrb[175].mxu1  ;;  %2238 = vmatmul.mubr.bf16.gmra.mrb[168].mxu0 %v1729_v12  ;;  %v1657_v15 = vmax.f32 %v1501_v63, 0.0 }
 0x2f9   :  { %v1507_v10 = vadd.f32 %v1506_v6, %v3238_v59  ;;  %v1658_v20 = vmax.f32 %v1503_v46, 0.0 }
 0x2fa   :  { %v1659_v18 = vmax.f32 %v1505_v31, 0.0 }
 0x2fb   :  { %v1660_v21 = vmax.f32 %v1507_v10, 0.0  ;;  %v1979_v22 = vpop.f32.mrb[64].mxu0 }
 0x2fc   :  { %v1731_v23 = vpack.c.bf16 %v1659_v18, %v1657_v15  ;;  %v1980_v0 = vadd.f32 %v1979_v22, %v3364_v8  ;;  %v1981_v26 = vpop.f32.mrb[65].mxu0 }
 0x2fd   :  { %v1732_v30 = vpack.c.bf16 %v1660_v21, %v1658_v20  ;;  %v1982_v19 = vadd.f32 %v1981_v26, %v3368_v11  ;;  %v1510_v35 = vpop.f32.mrb[176].mxu1  ;;  %v1983_v24 = vpop.f32.mrb[66].mxu0 }
 0x2fe   :  { %2298 = vst [vmem:[#allocation10] sm:$0xff] %v1980_v0  ;;  %v1511_v37 = vadd.f32 %v1510_v35, %v3234_v29  ;;  %v1984_v25 = vadd.f32 %v1983_v24, %v3364_v8  ;;  %v1512_v39 = vpop.f32.mrb[177].mxu1  ;;  %v1985_v40 = vpop.f32.mrb[67].mxu0 }
 0x2ff   :  { %2299 = vst [vmem:[#allocation10 + $0x8] sm:$0xff] %v1982_v19  ;;  %v1513_v43 = vadd.f32 %v1512_v39, %v3238_v59  ;;  %v1986_v45 = vadd.f32 %v1985_v40, %v3368_v11  ;;  %v1514_v47 = vpop.f32.mrb[178].mxu1  ;;  %2247 = vmatprep.mubr.bf16.mxu0 %v1732_v30 }
 0x300   :  { %2300 = vst [vmem:[#allocation10 + $0x10] sm:$0xff] %v1984_v25  ;;  %v1515_v48 = vadd.f32 %v1514_v47, %v3234_v29  ;;  %v1516_v49 = vpop.f32.mrb[179].mxu1  ;;  %2248 = vmatmul.mubr.bf16.gmra.mrb[172].mxu0 %v1731_v23  ;;  %v1661_v13 = vmax.f32 %v1511_v37, 0.0 }
 0x301   :  { %2301 = vst [vmem:[#allocation10 + $0x18] sm:$0xff] %v1986_v45  ;;  %v1517_v50 = vadd.f32 %v1516_v49, %v3238_v59  ;;  %v1662_v52 = vmax.f32 %v1513_v43, 0.0 }
 0x302   :  { %v1663_v51 = vmax.f32 %v1515_v48, 0.0 }
 0x303   :  { %v1664_v9 = vmax.f32 %v1517_v50, 0.0  ;;  %v1989_v54 = vpop.f32.mrb[68].mxu0 }
 0x304   :  { %v1733_v55 = vpack.c.bf16 %v1663_v51, %v1661_v13  ;;  %v1990_v61 = vadd.f32 %v1989_v54, %v3364_v8  ;;  %v1991_v28 = vpop.f32.mrb[69].mxu0 }
 0x305   :  { %v1734_v62 = vpack.c.bf16 %v1664_v9, %v1662_v52  ;;  %v1992_v27 = vadd.f32 %v1991_v28, %v3368_v11  ;;  %v1520_v32 = vpop.f32.mrb[180].mxu1  ;;  %v1993_v60 = vpop.f32.mrb[70].mxu0 }
 0x306   :  { %2302 = vst [vmem:[#allocation10 + $0x20] sm:$0xff] %v1990_v61  ;;  %v1521_v1 = vadd.f32 %v1520_v32, %v3234_v29  ;;  %v1994_v33 = vadd.f32 %v1993_v60, %v3364_v8  ;;  %v1522_v5 = vpop.f32.mrb[181].mxu1  ;;  %v1995_v36 = vpop.f32.mrb[71].mxu0 }
 0x307   :  { %2303 = vst [vmem:[#allocation10 + $0x28] sm:$0xff] %v1992_v27  ;;  %v1523_v4 = vadd.f32 %v1522_v5, %v3238_v59  ;;  %v1996_v2 = vadd.f32 %v1995_v36, %v3368_v11  ;;  %v1524_v7 = vpop.f32.mrb[182].mxu1  ;;  %2257 = vmatprep.mubr.bf16.mxu0 %v1734_v62 }
 0x308   :  { %2304 = vst [vmem:[#allocation10 + $0x30] sm:$0xff] %v1994_v33  ;;  %v1525_v41 = vadd.f32 %v1524_v7, %v3234_v29  ;;  %v1526_v44 = vpop.f32.mrb[183].mxu1  ;;  %2258 = vmatmul.mubr.bf16.gmra.mrb[176].mxu0 %v1733_v55  ;;  %v1665_v17 = vmax.f32 %v1521_v1, 0.0 }
 0x309   :  { %2305 = vst [vmem:[#allocation10 + $0x38] sm:$0xff] %v1996_v2  ;;  %v1527_v14 = vadd.f32 %v1526_v44, %v3238_v59  ;;  %v1666_v56 = vmax.f32 %v1523_v4, 0.0 }
 0x30a   :  { %v1667_v53 = vmax.f32 %v1525_v41, 0.0 }
 0x30b   :  { %v1668_v34 = vmax.f32 %v1527_v14, 0.0  ;;  %v1999_v38 = vpop.f32.mrb[72].mxu0 }
 0x30c   :  { %v1735_v12 = vpack.c.bf16 %v1667_v53, %v1665_v17  ;;  %v2000_v16 = vadd.f32 %v1999_v38, %v3364_v8  ;;  %v2001_v57 = vpop.f32.mrb[73].mxu0 }
 0x30d   :  { %v1736_v58 = vpack.c.bf16 %v1668_v34, %v1666_v56  ;;  %v2002_v63 = vadd.f32 %v2001_v57, %v3368_v11  ;;  %v1530_v42 = vpop.f32.mrb[184].mxu1  ;;  %v2003_v46 = vpop.f32.mrb[74].mxu0 }
 0x30e   :  { %2306 = vst [vmem:[#allocation10 + $0x40] sm:$0xff] %v2000_v16  ;;  %v1531_v3 = vadd.f32 %v1530_v42, %v3234_v29  ;;  %v2004_v31 = vadd.f32 %v2003_v46, %v3364_v8  ;;  %v1532_v6 = vpop.f32.mrb[185].mxu1  ;;  %v2005_v10 = vpop.f32.mrb[75].mxu0 }
 0x30f   :  { %2307 = vst [vmem:[#allocation10 + $0x48] sm:$0xff] %v2002_v63  ;;  %v1533_v15 = vadd.f32 %v1532_v6, %v3238_v59  ;;  %v2006_v18 = vadd.f32 %v2005_v10, %v3368_v11  ;;  %v1534_v20 = vpop.f32.mrb[186].mxu1  ;;  %2267 = vmatprep.mubr.bf16.mxu0 %v1736_v58 }
 0x310   :  { %2308 = vst [vmem:[#allocation10 + $0x50] sm:$0xff] %v2004_v31  ;;  %v1535_v21 = vadd.f32 %v1534_v20, %v3234_v29  ;;  %v1536_v22 = vpop.f32.mrb[187].mxu1  ;;  %2268 = vmatmul.mubr.bf16.gmra.mrb[180].mxu0 %v1735_v12  ;;  %v1669_v0 = vmax.f32 %v1531_v3, 0.0 }
 0x311   :  { %2309 = vst [vmem:[#allocation10 + $0x58] sm:$0xff] %v2006_v18  ;;  %v1537_v23 = vadd.f32 %v1536_v22, %v3238_v59  ;;  %v1670_v30 = vmax.f32 %v1533_v15, 0.0 }
 0x312   :  { %v1671_v26 = vmax.f32 %v1535_v21, 0.0 }
 0x313   :  { %v1672_v19 = vmax.f32 %v1537_v23, 0.0  ;;  %v2009_v35 = vpop.f32.mrb[76].mxu0 }
 0x314   :  { %v1737_v24 = vpack.c.bf16 %v1671_v26, %v1669_v0  ;;  %v2010_v37 = vadd.f32 %v2009_v35, %v3364_v8  ;;  %v2011_v25 = vpop.f32.mrb[77].mxu0 }
 0x315   :  { %v1738_v39 = vpack.c.bf16 %v1672_v19, %v1670_v30  ;;  %v2012_v40 = vadd.f32 %v2011_v25, %v3368_v11  ;;  %v1540_v43 = vpop.f32.mrb[188].mxu1  ;;  %v2013_v45 = vpop.f32.mrb[78].mxu0 }
 0x316   :  { %2310 = vst [vmem:[#allocation10 + $0x60] sm:$0xff] %v2010_v37  ;;  %v1541_v47 = vadd.f32 %v1540_v43, %v3234_v29  ;;  %v2014_v48 = vadd.f32 %v2013_v45, %v3364_v8  ;;  %v1542_v49 = vpop.f32.mrb[189].mxu1  ;;  %v2015_v50 = vpop.f32.mrb[79].mxu0 }
 0x317   :  { %2311 = vst [vmem:[#allocation10 + $0x68] sm:$0xff] %v2012_v40  ;;  %v1543_v13 = vadd.f32 %v1542_v49, %v3238_v59  ;;  %v2016_v51 = vadd.f32 %v2015_v50, %v3368_v11  ;;  %v1544_v52 = vpop.f32.mrb[190].mxu1  ;;  %2277 = vmatprep.mubr.bf16.mxu0 %v1738_v39 }
 0x318   :  { %2312 = vst [vmem:[#allocation10 + $0x70] sm:$0xff] %v2014_v48  ;;  %v1545_v9 = vadd.f32 %v1544_v52, %v3234_v29  ;;  %v1546_v54 = vpop.f32.mrb[191].mxu1  ;;  %2278 = vmatmul.mubr.bf16.gmra.mrb[184].mxu0 %v1737_v24  ;;  %v1673_v61 = vmax.f32 %v1541_v47, 0.0 }
 0x319   :  { %2313 = vst [vmem:[#allocation10 + $0x78] sm:$0xff] %v2016_v51  ;;  %v1547_v55 = vadd.f32 %v1546_v54, %v3238_v59  ;;  %v1674_v62 = vmax.f32 %v1543_v13, 0.0 }
 0x31a   :  { %v1675_v28 = vmax.f32 %v1545_v9, 0.0 }
 0x31b   :  { %v1676_v27 = vmax.f32 %v1547_v55, 0.0  ;;  %v2019_v32 = vpop.f32.mrb[80].mxu0 }
 0x31c   :  { %v1739_v60 = vpack.c.bf16 %v1675_v28, %v1673_v61  ;;  %v2020_v1 = vadd.f32 %v2019_v32, %v3364_v8  ;;  %v2021_v33 = vpop.f32.mrb[81].mxu0 }
 0x31d   :  { %v1740_v5 = vpack.c.bf16 %v1676_v27, %v1674_v62  ;;  %v2022_v36 = vadd.f32 %v2021_v33, %v3368_v11  ;;  %v2023_v4 = vpop.f32.mrb[82].mxu0 }
 0x31e   :  { %2314 = vst [vmem:[#allocation10 + $0x80] sm:$0xff] %v2020_v1  ;;  %v2024_v29 = vadd.f32 %v2023_v4, %v3364_v8  ;;  %v2025_v2 = vpop.f32.mrb[83].mxu0 }
 0x31f   :  { %2315 = vst [vmem:[#allocation10 + $0x88] sm:$0xff] %v2022_v36  ;;  %v2026_v59 = vadd.f32 %v2025_v2, %v3368_v11  ;;  %2287 = vmatprep.mubr.bf16.mxu0 %v1740_v5 }
 0x320   :  { %2316 = vst [vmem:[#allocation10 + $0x90] sm:$0xff] %v2024_v29  ;;  %2288 = vmatmul.mubr.bf16.gmra.mrb[188].mxu0 %v1739_v60 }
 0x321   :  { %2317 = vst [vmem:[#allocation10 + $0x98] sm:$0xff] %v2026_v59 }
 0x323   :  { %v2029_v7 = vpop.f32.mrb[84].mxu0 }
 0x324   :  { %v2030_v41 = vadd.f32 %v2029_v7, %v3364_v8  ;;  %v2031_v44 = vpop.f32.mrb[85].mxu0 }
 0x325   :  { %v2032_v14 = vadd.f32 %v2031_v44, %v3368_v11  ;;  %v2033_v17 = vpop.f32.mrb[86].mxu0 }
 0x326   :  { %2318 = vst [vmem:[#allocation10 + $0xa0] sm:$0xff] %v2030_v41  ;;  %v2034_v53 = vadd.f32 %v2033_v17, %v3364_v8  ;;  %v2035_v56 = vpop.f32.mrb[87].mxu0 }
 0x327   :  { %2319 = vst [vmem:[#allocation10 + $0xa8] sm:$0xff] %v2032_v14  ;;  %v2036_v34 = vadd.f32 %v2035_v56, %v3368_v11 }
 0x328   :  { %2320 = vst [vmem:[#allocation10 + $0xb0] sm:$0xff] %v2034_v53 }
 0x329   :  { %2321 = vst [vmem:[#allocation10 + $0xb8] sm:$0xff] %v2036_v34 }
 0x32b   :  { %v2039_v38 = vpop.f32.mrb[88].mxu0 }
 0x32c   :  { %v2040_v12 = vadd.f32 %v2039_v38, %v3364_v8  ;;  %v2041_v16 = vpop.f32.mrb[89].mxu0 }
 0x32d   :  { %v2042_v57 = vadd.f32 %v2041_v16, %v3368_v11  ;;  %v2043_v58 = vpop.f32.mrb[90].mxu0 }
 0x32e   :  { %2322 = vst [vmem:[#allocation10 + $0xc0] sm:$0xff] %v2040_v12  ;;  %v2044_v63 = vadd.f32 %v2043_v58, %v3364_v8  ;;  %v2045_v42 = vpop.f32.mrb[91].mxu0 }
 0x32f   :  { %2323 = vst [vmem:[#allocation10 + $0xc8] sm:$0xff] %v2042_v57  ;;  %v2046_v46 = vadd.f32 %v2045_v42, %v3368_v11 }
 0x330   :  { %2324 = vst [vmem:[#allocation10 + $0xd0] sm:$0xff] %v2044_v63 }
 0x331   :  { %2325 = vst [vmem:[#allocation10 + $0xd8] sm:$0xff] %v2046_v46 }
 0x333   :  { %v2049_v3 = vpop.f32.mrb[92].mxu0 }
 0x334   :  { %v2050_v31 = vadd.f32 %v2049_v3, %v3364_v8  ;;  %v2051_v6 = vpop.f32.mrb[93].mxu0 }
 0x335   :  { %v2052_v10 = vadd.f32 %v2051_v6, %v3368_v11  ;;  %v2053_v15 = vpop.f32.mrb[94].mxu0 }
 0x336   :  { %2326 = vst [vmem:[#allocation10 + $0xe0] sm:$0xff] %v2050_v31  ;;  %v2054_v18 = vadd.f32 %v2053_v15, %v3364_v8  ;;  %v2055_v20 = vpop.f32.mrb[95].mxu0 }
 0x337   :  { %2327 = vst [vmem:[#allocation10 + $0xe8] sm:$0xff] %v2052_v10  ;;  %v2056_v21 = vadd.f32 %v2055_v20, %v3368_v11 }
 0x338   :  { %2328 = vst [vmem:[#allocation10 + $0xf0] sm:$0xff] %v2054_v18 }
 0x339   :  { %2329 = vst [vmem:[#allocation10 + $0xf8] sm:$0xff] %v2056_v21 }
 0x33b   :  { %v2059_v22 = vpop.f32.mrb[96].mxu0 }
 0x33c   :  { %v2060_v23 = vadd.f32 %v2059_v22, %v3364_v8  ;;  %v2061_v0 = vpop.f32.mrb[97].mxu0 }
 0x33d   :  { %v2062_v26 = vadd.f32 %v2061_v0, %v3368_v11  ;;  %v2063_v30 = vpop.f32.mrb[98].mxu0 }
 0x33e   :  { %2330 = vst [vmem:[#allocation10 + $0x100] sm:$0xff] %v2060_v23  ;;  %v2064_v19 = vadd.f32 %v2063_v30, %v3364_v8  ;;  %v2065_v35 = vpop.f32.mrb[99].mxu0 }
 0x33f   :  { %2331 = vst [vmem:[#allocation10 + $0x108] sm:$0xff] %v2062_v26  ;;  %v2066_v24 = vadd.f32 %v2065_v35, %v3368_v11 }
 0x340   :  { %2332 = vst [vmem:[#allocation10 + $0x110] sm:$0xff] %v2064_v19 }
 0x341   :  { %2333 = vst [vmem:[#allocation10 + $0x118] sm:$0xff] %v2066_v24 }
 0x343   :  { %v2069_v37 = vpop.f32.mrb[100].mxu0 }
 0x344   :  { %v2070_v25 = vadd.f32 %v2069_v37, %v3364_v8  ;;  %v2071_v39 = vpop.f32.mrb[101].mxu0 }
 0x345   :  { %v2072_v40 = vadd.f32 %v2071_v39, %v3368_v11  ;;  %v2073_v43 = vpop.f32.mrb[102].mxu0 }
 0x346   :  { %2334 = vst [vmem:[#allocation10 + $0x120] sm:$0xff] %v2070_v25  ;;  %v2074_v45 = vadd.f32 %v2073_v43, %v3364_v8  ;;  %v2075_v47 = vpop.f32.mrb[103].mxu0 }
 0x347   :  { %2335 = vst [vmem:[#allocation10 + $0x128] sm:$0xff] %v2072_v40  ;;  %v2076_v48 = vadd.f32 %v2075_v47, %v3368_v11 }
 0x348   :  { %2336 = vst [vmem:[#allocation10 + $0x130] sm:$0xff] %v2074_v45 }
 0x349   :  { %2337 = vst [vmem:[#allocation10 + $0x138] sm:$0xff] %v2076_v48 }
 0x34b   :  { %v2079_v49 = vpop.f32.mrb[104].mxu0 }
 0x34c   :  { %v2080_v50 = vadd.f32 %v2079_v49, %v3364_v8  ;;  %v2081_v13 = vpop.f32.mrb[105].mxu0 }
 0x34d   :  { %v2082_v51 = vadd.f32 %v2081_v13, %v3368_v11  ;;  %v2083_v52 = vpop.f32.mrb[106].mxu0 }
 0x34e   :  { %2338 = vst [vmem:[#allocation10 + $0x140] sm:$0xff] %v2080_v50  ;;  %v2084_v9 = vadd.f32 %v2083_v52, %v3364_v8  ;;  %v2085_v54 = vpop.f32.mrb[107].mxu0 }
 0x34f   :  { %2339 = vst [vmem:[#allocation10 + $0x148] sm:$0xff] %v2082_v51  ;;  %v2086_v55 = vadd.f32 %v2085_v54, %v3368_v11 }
 0x350   :  { %2340 = vst [vmem:[#allocation10 + $0x150] sm:$0xff] %v2084_v9 }
 0x351   :  { %2341 = vst [vmem:[#allocation10 + $0x158] sm:$0xff] %v2086_v55 }
 0x353   :  { %v2089_v61 = vpop.f32.mrb[108].mxu0 }
 0x354   :  { %v2090_v28 = vadd.f32 %v2089_v61, %v3364_v8  ;;  %v2091_v62 = vpop.f32.mrb[109].mxu0 }
 0x355   :  { %v2092_v27 = vadd.f32 %v2091_v62, %v3368_v11  ;;  %v2093_v32 = vpop.f32.mrb[110].mxu0 }
 0x356   :  { %2342 = vst [vmem:[#allocation10 + $0x160] sm:$0xff] %v2090_v28  ;;  %v2094_v60 = vadd.f32 %v2093_v32, %v3364_v8  ;;  %v2095_v1 = vpop.f32.mrb[111].mxu0 }
 0x357   :  { %2343 = vst [vmem:[#allocation10 + $0x168] sm:$0xff] %v2092_v27  ;;  %v2096_v33 = vadd.f32 %v2095_v1, %v3368_v11 }
 0x358   :  { %2344 = vst [vmem:[#allocation10 + $0x170] sm:$0xff] %v2094_v60 }
 0x359   :  { %2345 = vst [vmem:[#allocation10 + $0x178] sm:$0xff] %v2096_v33 }
 0x35b   :  { %v2099_v5 = vpop.f32.mrb[112].mxu0 }
 0x35c   :  { %v2100_v36 = vadd.f32 %v2099_v5, %v3364_v8  ;;  %v2101_v4 = vpop.f32.mrb[113].mxu0 }
 0x35d   :  { %v2102_v29 = vadd.f32 %v2101_v4, %v3368_v11  ;;  %v2103_v2 = vpop.f32.mrb[114].mxu0 }
 0x35e   :  { %2346 = vst [vmem:[#allocation10 + $0x180] sm:$0xff] %v2100_v36  ;;  %v2104_v59 = vadd.f32 %v2103_v2, %v3364_v8  ;;  %v2105_v7 = vpop.f32.mrb[115].mxu0 }
 0x35f   :  { %2347 = vst [vmem:[#allocation10 + $0x188] sm:$0xff] %v2102_v29  ;;  %v2106_v41 = vadd.f32 %v2105_v7, %v3368_v11 }
 0x360   :  { %2348 = vst [vmem:[#allocation10 + $0x190] sm:$0xff] %v2104_v59 }
 0x361   :  { %2349 = vst [vmem:[#allocation10 + $0x198] sm:$0xff] %v2106_v41 }
 0x363   :  { %v2109_v44 = vpop.f32.mrb[116].mxu0 }
 0x364   :  { %v2110_v14 = vadd.f32 %v2109_v44, %v3364_v8  ;;  %v2111_v17 = vpop.f32.mrb[117].mxu0 }
 0x365   :  { %v2112_v53 = vadd.f32 %v2111_v17, %v3368_v11  ;;  %v2113_v56 = vpop.f32.mrb[118].mxu0 }
 0x366   :  { %2350 = vst [vmem:[#allocation10 + $0x1a0] sm:$0xff] %v2110_v14  ;;  %v2114_v34 = vadd.f32 %v2113_v56, %v3364_v8  ;;  %v2115_v38 = vpop.f32.mrb[119].mxu0 }
 0x367   :  { %2351 = vst [vmem:[#allocation10 + $0x1a8] sm:$0xff] %v2112_v53  ;;  %v2116_v12 = vadd.f32 %v2115_v38, %v3368_v11 }
 0x368   :  { %2352 = vst [vmem:[#allocation10 + $0x1b0] sm:$0xff] %v2114_v34 }
 0x369   :  { %2353 = vst [vmem:[#allocation10 + $0x1b8] sm:$0xff] %v2116_v12 }
 0x36b   :  { %v2119_v16 = vpop.f32.mrb[120].mxu0 }
 0x36c   :  { %v2120_v57 = vadd.f32 %v2119_v16, %v3364_v8  ;;  %v2121_v58 = vpop.f32.mrb[121].mxu0 }
 0x36d   :  { %v2122_v63 = vadd.f32 %v2121_v58, %v3368_v11  ;;  %v2123_v42 = vpop.f32.mrb[122].mxu0 }
 0x36e   :  { %2354 = vst [vmem:[#allocation10 + $0x1c0] sm:$0xff] %v2120_v57  ;;  %v2124_v46 = vadd.f32 %v2123_v42, %v3364_v8  ;;  %v2125_v3 = vpop.f32.mrb[123].mxu0 }
 0x36f   :  { %2355 = vst [vmem:[#allocation10 + $0x1c8] sm:$0xff] %v2122_v63  ;;  %v2126_v31 = vadd.f32 %v2125_v3, %v3368_v11 }
 0x370   :  { %2356 = vst [vmem:[#allocation10 + $0x1d0] sm:$0xff] %v2124_v46 }
 0x371   :  { %2357 = vst [vmem:[#allocation10 + $0x1d8] sm:$0xff] %v2126_v31 }
 0x373   :  { %v2129_v6 = vpop.f32.mrb[124].mxu0 }
 0x374   :  { %v2130_v10 = vadd.f32 %v2129_v6, %v3364_v8  ;;  %v2131_v15 = vpop.f32.mrb[125].mxu0 }
 0x375   :  { %v2132_v18 = vadd.f32 %v2131_v15, %v3368_v11  ;;  %v2133_v20 = vpop.f32.mrb[126].mxu0 }
 0x376   :  { %2358 = vst [vmem:[#allocation10 + $0x1e0] sm:$0xff] %v2130_v10  ;;  %v2134_v21 = vadd.f32 %v2133_v20, %v3364_v8  ;;  %v2135_v22 = vpop.f32.mrb[127].mxu0 }
 0x377   :  { %2359 = vst [vmem:[#allocation10 + $0x1e8] sm:$0xff] %v2132_v18  ;;  %v2136_v23 = vadd.f32 %v2135_v22, %v3368_v11 }
 0x378   :  { %2360 = vst [vmem:[#allocation10 + $0x1f0] sm:$0xff] %v2134_v21 }
 0x379   :  { %2361 = vst [vmem:[#allocation10 + $0x1f8] sm:$0xff] %v2136_v23 }
 0x37b   :  { %v2139_v0 = vpop.f32.mrb[128].mxu0 }
 0x37c   :  { %v2140_v26 = vadd.f32 %v2139_v0, %v3364_v8  ;;  %v2141_v30 = vpop.f32.mrb[129].mxu0 }
 0x37d   :  { %v2142_v19 = vadd.f32 %v2141_v30, %v3368_v11  ;;  %v2143_v35 = vpop.f32.mrb[130].mxu0 }
 0x37e   :  { %2362 = vst [vmem:[#allocation10 + $0x200] sm:$0xff] %v2140_v26  ;;  %v2144_v24 = vadd.f32 %v2143_v35, %v3364_v8  ;;  %v2145_v37 = vpop.f32.mrb[131].mxu0 }
 0x37f   :  { %2363 = vst [vmem:[#allocation10 + $0x208] sm:$0xff] %v2142_v19  ;;  %v2146_v25 = vadd.f32 %v2145_v37, %v3368_v11 }
 0x380   :  { %2364 = vst [vmem:[#allocation10 + $0x210] sm:$0xff] %v2144_v24 }
 0x381   :  { %2365 = vst [vmem:[#allocation10 + $0x218] sm:$0xff] %v2146_v25 }
 0x383   :  { %v2149_v39 = vpop.f32.mrb[132].mxu0 }
 0x384   :  { %v2150_v40 = vadd.f32 %v2149_v39, %v3364_v8  ;;  %v2151_v43 = vpop.f32.mrb[133].mxu0 }
 0x385   :  { %v2152_v45 = vadd.f32 %v2151_v43, %v3368_v11  ;;  %v2153_v47 = vpop.f32.mrb[134].mxu0 }
 0x386   :  { %2366 = vst [vmem:[#allocation10 + $0x220] sm:$0xff] %v2150_v40  ;;  %v2154_v48 = vadd.f32 %v2153_v47, %v3364_v8  ;;  %v2155_v49 = vpop.f32.mrb[135].mxu0 }
 0x387   :  { %2367 = vst [vmem:[#allocation10 + $0x228] sm:$0xff] %v2152_v45  ;;  %v2156_v50 = vadd.f32 %v2155_v49, %v3368_v11 }
 0x388   :  { %2368 = vst [vmem:[#allocation10 + $0x230] sm:$0xff] %v2154_v48 }
 0x389   :  { %2369 = vst [vmem:[#allocation10 + $0x238] sm:$0xff] %v2156_v50 }
 0x38b   :  { %v2159_v13 = vpop.f32.mrb[136].mxu0 }
 0x38c   :  { %v2160_v51 = vadd.f32 %v2159_v13, %v3364_v8  ;;  %v2161_v52 = vpop.f32.mrb[137].mxu0 }
 0x38d   :  { %v2162_v9 = vadd.f32 %v2161_v52, %v3368_v11  ;;  %v2163_v54 = vpop.f32.mrb[138].mxu0 }
 0x38e   :  { %2370 = vst [vmem:[#allocation10 + $0x240] sm:$0xff] %v2160_v51  ;;  %v2164_v55 = vadd.f32 %v2163_v54, %v3364_v8  ;;  %v2165_v61 = vpop.f32.mrb[139].mxu0 }
 0x38f   :  { %2371 = vst [vmem:[#allocation10 + $0x248] sm:$0xff] %v2162_v9  ;;  %v2166_v28 = vadd.f32 %v2165_v61, %v3368_v11 }
 0x390   :  { %2372 = vst [vmem:[#allocation10 + $0x250] sm:$0xff] %v2164_v55 }
 0x391   :  { %2373 = vst [vmem:[#allocation10 + $0x258] sm:$0xff] %v2166_v28 }
 0x393   :  { %v2169_v62 = vpop.f32.mrb[140].mxu0 }
 0x394   :  { %v2170_v27 = vadd.f32 %v2169_v62, %v3364_v8  ;;  %v2171_v32 = vpop.f32.mrb[141].mxu0 }
 0x395   :  { %v2172_v60 = vadd.f32 %v2171_v32, %v3368_v11  ;;  %v2173_v1 = vpop.f32.mrb[142].mxu0 }
 0x396   :  { %2374 = vst [vmem:[#allocation10 + $0x260] sm:$0xff] %v2170_v27  ;;  %v2174_v33 = vadd.f32 %v2173_v1, %v3364_v8  ;;  %v2175_v5 = vpop.f32.mrb[143].mxu0 }
 0x397   :  { %2375 = vst [vmem:[#allocation10 + $0x268] sm:$0xff] %v2172_v60  ;;  %v2176_v36 = vadd.f32 %v2175_v5, %v3368_v11 }
 0x398   :  { %2376 = vst [vmem:[#allocation10 + $0x270] sm:$0xff] %v2174_v33 }
 0x399   :  { %2377 = vst [vmem:[#allocation10 + $0x278] sm:$0xff] %v2176_v36 }
 0x39b   :  { %v2179_v4 = vpop.f32.mrb[144].mxu0 }
 0x39c   :  { %v2180_v29 = vadd.f32 %v2179_v4, %v3364_v8  ;;  %v2181_v2 = vpop.f32.mrb[145].mxu0 }
 0x39d   :  { %v2182_v59 = vadd.f32 %v2181_v2, %v3368_v11  ;;  %v2183_v7 = vpop.f32.mrb[146].mxu0 }
 0x39e   :  { %2378 = vst [vmem:[#allocation10 + $0x280] sm:$0xff] %v2180_v29  ;;  %v2184_v41 = vadd.f32 %v2183_v7, %v3364_v8  ;;  %v2185_v44 = vpop.f32.mrb[147].mxu0 }
 0x39f   :  { %2379 = vst [vmem:[#allocation10 + $0x288] sm:$0xff] %v2182_v59  ;;  %v2186_v14 = vadd.f32 %v2185_v44, %v3368_v11 }
 0x3a0   :  { %2380 = vst [vmem:[#allocation10 + $0x290] sm:$0xff] %v2184_v41 }
 0x3a1   :  { %2381 = vst [vmem:[#allocation10 + $0x298] sm:$0xff] %v2186_v14 }
 0x3a3   :  { %v2189_v17 = vpop.f32.mrb[148].mxu0 }
 0x3a4   :  { %v2190_v53 = vadd.f32 %v2189_v17, %v3364_v8  ;;  %v2191_v56 = vpop.f32.mrb[149].mxu0 }
 0x3a5   :  { %v2192_v34 = vadd.f32 %v2191_v56, %v3368_v11  ;;  %v2193_v38 = vpop.f32.mrb[150].mxu0 }
 0x3a6   :  { %2382 = vst [vmem:[#allocation10 + $0x2a0] sm:$0xff] %v2190_v53  ;;  %v2194_v12 = vadd.f32 %v2193_v38, %v3364_v8  ;;  %v2195_v16 = vpop.f32.mrb[151].mxu0 }
 0x3a7   :  { %2383 = vst [vmem:[#allocation10 + $0x2a8] sm:$0xff] %v2192_v34  ;;  %v2196_v57 = vadd.f32 %v2195_v16, %v3368_v11 }
 0x3a8   :  { %2384 = vst [vmem:[#allocation10 + $0x2b0] sm:$0xff] %v2194_v12 }
 0x3a9   :  { %2385 = vst [vmem:[#allocation10 + $0x2b8] sm:$0xff] %v2196_v57 }
 0x3ab   :  { %v2199_v58 = vpop.f32.mrb[152].mxu0 }
 0x3ac   :  { %v2200_v63 = vadd.f32 %v2199_v58, %v3364_v8  ;;  %v2201_v42 = vpop.f32.mrb[153].mxu0 }
 0x3ad   :  { %v2202_v46 = vadd.f32 %v2201_v42, %v3368_v11  ;;  %v2203_v3 = vpop.f32.mrb[154].mxu0 }
 0x3ae   :  { %2386 = vst [vmem:[#allocation10 + $0x2c0] sm:$0xff] %v2200_v63  ;;  %v2204_v31 = vadd.f32 %v2203_v3, %v3364_v8  ;;  %v2205_v6 = vpop.f32.mrb[155].mxu0 }
 0x3af   :  { %2387 = vst [vmem:[#allocation10 + $0x2c8] sm:$0xff] %v2202_v46  ;;  %v2206_v10 = vadd.f32 %v2205_v6, %v3368_v11 }
 0x3b0   :  { %2388 = vst [vmem:[#allocation10 + $0x2d0] sm:$0xff] %v2204_v31 }
 0x3b1   :  { %2389 = vst [vmem:[#allocation10 + $0x2d8] sm:$0xff] %v2206_v10 }
 0x3b3   :  { %v2209_v15 = vpop.f32.mrb[156].mxu0 }
 0x3b4   :  { %v2210_v18 = vadd.f32 %v2209_v15, %v3364_v8  ;;  %v2211_v20 = vpop.f32.mrb[157].mxu0 }
 0x3b5   :  { %v2212_v21 = vadd.f32 %v2211_v20, %v3368_v11  ;;  %v2213_v22 = vpop.f32.mrb[158].mxu0 }
 0x3b6   :  { %2390 = vst [vmem:[#allocation10 + $0x2e0] sm:$0xff] %v2210_v18  ;;  %v2214_v23 = vadd.f32 %v2213_v22, %v3364_v8  ;;  %v2215_v0 = vpop.f32.mrb[159].mxu0 }
 0x3b7   :  { %2391 = vst [vmem:[#allocation10 + $0x2e8] sm:$0xff] %v2212_v21  ;;  %v2216_v26 = vadd.f32 %v2215_v0, %v3368_v11 }
 0x3b8   :  { %2392 = vst [vmem:[#allocation10 + $0x2f0] sm:$0xff] %v2214_v23 }
 0x3b9   :  { %2393 = vst [vmem:[#allocation10 + $0x2f8] sm:$0xff] %v2216_v26 }
 0x3bb   :  { %v2219_v30 = vpop.f32.mrb[160].mxu0 }
 0x3bc   :  { %v2220_v19 = vadd.f32 %v2219_v30, %v3364_v8  ;;  %v2221_v35 = vpop.f32.mrb[161].mxu0 }
 0x3bd   :  { %v2222_v24 = vadd.f32 %v2221_v35, %v3368_v11  ;;  %v2223_v37 = vpop.f32.mrb[162].mxu0 }
 0x3be   :  { %2394 = vst [vmem:[#allocation10 + $0x300] sm:$0xff] %v2220_v19  ;;  %v2224_v25 = vadd.f32 %v2223_v37, %v3364_v8  ;;  %v2225_v39 = vpop.f32.mrb[163].mxu0 }
 0x3bf   :  { %2395 = vst [vmem:[#allocation10 + $0x308] sm:$0xff] %v2222_v24  ;;  %v2226_v40 = vadd.f32 %v2225_v39, %v3368_v11 }
 0x3c0   :  { %2396 = vst [vmem:[#allocation10 + $0x310] sm:$0xff] %v2224_v25 }
 0x3c1   :  { %2397 = vst [vmem:[#allocation10 + $0x318] sm:$0xff] %v2226_v40 }
 0x3c3   :  { %v2229_v43 = vpop.f32.mrb[164].mxu0 }
 0x3c4   :  { %v2230_v45 = vadd.f32 %v2229_v43, %v3364_v8  ;;  %v2231_v47 = vpop.f32.mrb[165].mxu0 }
 0x3c5   :  { %v2232_v48 = vadd.f32 %v2231_v47, %v3368_v11  ;;  %v2233_v49 = vpop.f32.mrb[166].mxu0 }
 0x3c6   :  { %2398 = vst [vmem:[#allocation10 + $0x320] sm:$0xff] %v2230_v45  ;;  %v2234_v50 = vadd.f32 %v2233_v49, %v3364_v8  ;;  %v2235_v13 = vpop.f32.mrb[167].mxu0 }
 0x3c7   :  { %2399 = vst [vmem:[#allocation10 + $0x328] sm:$0xff] %v2232_v48  ;;  %v2236_v51 = vadd.f32 %v2235_v13, %v3368_v11 }
 0x3c8   :  { %2400 = vst [vmem:[#allocation10 + $0x330] sm:$0xff] %v2234_v50 }
 0x3c9   :  { %2401 = vst [vmem:[#allocation10 + $0x338] sm:$0xff] %v2236_v51 }
 0x3cb   :  { %v2239_v52 = vpop.f32.mrb[168].mxu0 }
 0x3cc   :  { %v2240_v9 = vadd.f32 %v2239_v52, %v3364_v8  ;;  %v2241_v54 = vpop.f32.mrb[169].mxu0 }
 0x3cd   :  { %v2242_v55 = vadd.f32 %v2241_v54, %v3368_v11  ;;  %v2243_v61 = vpop.f32.mrb[170].mxu0 }
 0x3ce   :  { %2402 = vst [vmem:[#allocation10 + $0x340] sm:$0xff] %v2240_v9  ;;  %v2244_v28 = vadd.f32 %v2243_v61, %v3364_v8  ;;  %v2245_v62 = vpop.f32.mrb[171].mxu0 }
 0x3cf   :  { %2403 = vst [vmem:[#allocation10 + $0x348] sm:$0xff] %v2242_v55  ;;  %v2246_v27 = vadd.f32 %v2245_v62, %v3368_v11 }
 0x3d0   :  { %2404 = vst [vmem:[#allocation10 + $0x350] sm:$0xff] %v2244_v28 }
 0x3d1   :  { %2405 = vst [vmem:[#allocation10 + $0x358] sm:$0xff] %v2246_v27 }
 0x3d3   :  { %v2249_v32 = vpop.f32.mrb[172].mxu0 }
 0x3d4   :  { %v2250_v60 = vadd.f32 %v2249_v32, %v3364_v8  ;;  %v2251_v1 = vpop.f32.mrb[173].mxu0 }
 0x3d5   :  { %v2252_v33 = vadd.f32 %v2251_v1, %v3368_v11  ;;  %v2253_v5 = vpop.f32.mrb[174].mxu0 }
 0x3d6   :  { %2406 = vst [vmem:[#allocation10 + $0x360] sm:$0xff] %v2250_v60  ;;  %v2254_v36 = vadd.f32 %v2253_v5, %v3364_v8  ;;  %v2255_v4 = vpop.f32.mrb[175].mxu0 }
 0x3d7   :  { %2407 = vst [vmem:[#allocation10 + $0x368] sm:$0xff] %v2252_v33  ;;  %v2256_v29 = vadd.f32 %v2255_v4, %v3368_v11 }
 0x3d8   :  { %2408 = vst [vmem:[#allocation10 + $0x370] sm:$0xff] %v2254_v36 }
 0x3d9   :  { %2409 = vst [vmem:[#allocation10 + $0x378] sm:$0xff] %v2256_v29 }
 0x3db   :  { %v2259_v2 = vpop.f32.mrb[176].mxu0 }
 0x3dc   :  { %v2260_v59 = vadd.f32 %v2259_v2, %v3364_v8  ;;  %v2261_v7 = vpop.f32.mrb[177].mxu0 }
 0x3dd   :  { %v2262_v41 = vadd.f32 %v2261_v7, %v3368_v11  ;;  %v2263_v44 = vpop.f32.mrb[178].mxu0 }
 0x3de   :  { %2410 = vst [vmem:[#allocation10 + $0x380] sm:$0xff] %v2260_v59  ;;  %v2264_v14 = vadd.f32 %v2263_v44, %v3364_v8  ;;  %v2265_v17 = vpop.f32.mrb[179].mxu0 }
 0x3df   :  { %2411 = vst [vmem:[#allocation10 + $0x388] sm:$0xff] %v2262_v41  ;;  %v2266_v53 = vadd.f32 %v2265_v17, %v3368_v11 }
 0x3e0   :  { %2412 = vst [vmem:[#allocation10 + $0x390] sm:$0xff] %v2264_v14 }
 0x3e1   :  { %2413 = vst [vmem:[#allocation10 + $0x398] sm:$0xff] %v2266_v53 }
 0x3e3   :  { %v2269_v56 = vpop.f32.mrb[180].mxu0 }
 0x3e4   :  { %v2270_v34 = vadd.f32 %v2269_v56, %v3364_v8  ;;  %v2271_v38 = vpop.f32.mrb[181].mxu0 }
 0x3e5   :  { %v2272_v12 = vadd.f32 %v2271_v38, %v3368_v11  ;;  %v2273_v16 = vpop.f32.mrb[182].mxu0 }
 0x3e6   :  { %2414 = vst [vmem:[#allocation10 + $0x3a0] sm:$0xff] %v2270_v34  ;;  %v2274_v57 = vadd.f32 %v2273_v16, %v3364_v8  ;;  %v2275_v58 = vpop.f32.mrb[183].mxu0 }
 0x3e7   :  { %2415 = vst [vmem:[#allocation10 + $0x3a8] sm:$0xff] %v2272_v12  ;;  %v2276_v63 = vadd.f32 %v2275_v58, %v3368_v11 }
 0x3e8   :  { %2416 = vst [vmem:[#allocation10 + $0x3b0] sm:$0xff] %v2274_v57 }
 0x3e9   :  { %2417 = vst [vmem:[#allocation10 + $0x3b8] sm:$0xff] %v2276_v63 }
 0x3eb   :  { %v2279_v42 = vpop.f32.mrb[184].mxu0 }
 0x3ec   :  { %v2280_v46 = vadd.f32 %v2279_v42, %v3364_v8  ;;  %v2281_v3 = vpop.f32.mrb[185].mxu0 }
 0x3ed   :  { %v2282_v31 = vadd.f32 %v2281_v3, %v3368_v11  ;;  %v2283_v6 = vpop.f32.mrb[186].mxu0 }
 0x3ee   :  { %2418 = vst [vmem:[#allocation10 + $0x3c0] sm:$0xff] %v2280_v46  ;;  %v2284_v10 = vadd.f32 %v2283_v6, %v3364_v8  ;;  %v2285_v15 = vpop.f32.mrb[187].mxu0 }
 0x3ef   :  { %2419 = vst [vmem:[#allocation10 + $0x3c8] sm:$0xff] %v2282_v31  ;;  %v2286_v18 = vadd.f32 %v2285_v15, %v3368_v11 }
 0x3f0   :  { %2420 = vst [vmem:[#allocation10 + $0x3d0] sm:$0xff] %v2284_v10 }
 0x3f1   :  { %2421 = vst [vmem:[#allocation10 + $0x3d8] sm:$0xff] %v2286_v18 }
 0x3f3   :  { %v2289_v20 = vpop.f32.mrb[188].mxu0 }
 0x3f4   :  { %v2290_v21 = vadd.f32 %v2289_v20, %v3364_v8  ;;  %v2291_v22 = vpop.f32.mrb[189].mxu0 }
 0x3f5   :  { %v2292_v23 = vadd.f32 %v2291_v22, %v3368_v11  ;;  %v2293_v0 = vpop.f32.mrb[190].mxu0 }
 0x3f6   :  { %2422 = vst [vmem:[#allocation10 + $0x3e0] sm:$0xff] %v2290_v21  ;;  %v2294_v26 = vadd.f32 %v2293_v0, %v3364_v8  ;;  %v2295_v30 = vpop.f32.mrb[191].mxu0 }
 0x3f7   :  { %2423 = vst [vmem:[#allocation10 + $0x3e8] sm:$0xff] %v2292_v23  ;;  %v2296_v19 = vadd.f32 %v2295_v30, %v3368_v11 }
 0x3f8   :  { %2424 = vst [vmem:[#allocation10 + $0x3f0] sm:$0xff] %v2294_v26 }
 0x3f9   :  { %2425 = vst [vmem:[#allocation10 + $0x3f8] sm:$0xff] %v2296_v19 }
 0x3fa   :  { %2836 = shalt.err (!%p2833_p8)
}
 0x3fb   :  { %s2837_s10 = scalar_lea.hbm %s3533_s7, 16384 }
 0x3fc   :  { %p2838_p9 = scmp.ne.s32.totalorder %s3533_s7, %s2837_s10  ;;  %p2841_p10 = scmp.lt.u32.totalorder %s2837_s10, %s3533_s7 }
 0x3fe   :  { %p2843_p11 = pnand %p2841_p10, %p2838_p9 }
 0x400   :  { %2846 = shalt.err (!%p2843_p11)
}
 0x401   :  { %s2865_s18 = smov 256   ;;  %s2866_s0 = smov 16  }
 0x402   :  { %2437 = dma.vmem_to_hbm [thread:$0]  %s2432_s29, 16384, %s3533_s7, [#allocation4], %s2865_s18, %s2865_s18, %s2866_s0  }
 0x403   :  { %2853 = dma.done.wait [#allocation4], 16384  }
 0x404   :  { %2854 = vsyncadd [#allocation4], 4294950912 }
 0x405   :  { %2441 = vsyncpa [#allocation3], 1 }
 0x406   :  { %2442 = vsyncpa [#allocation6], 1 }
 0x407   :  { %2443 = vsyncpa [#allocation9], 1 }
 0x408   :  { %2444 = vsyncpa [#allocation4], 1 }

</bundles_post_ra>
